<compile_context>
chip_gen: v7x
topology: tpu7x:2x2x1
jax: 0.10.0
libtpu: 0.0.40
codegen_flags: <defaults>
</compile_context>

<pallas_src>
import functools

import jax
import jax.numpy as jnp
from jax import lax
from jax.experimental import pallas as pl
from jax.experimental.pallas import tpu as pltpu


def _conv_gn_silu_kernel(x_ref, w_ref, gsum_ref, gbcast_ref, gamma_ref, beta_ref,
                         o_ref, *, k, ho, wo, cpg, eps):
    # x_ref:      (Hp, Wp, C1)   padded per-sample input (NHWC slice)
    # w_ref:      (k*k, C1, C2)  conv weight, taps-major
    # gsum_ref:   (G, C2)        one-hot: sums per-channel stats into groups
    # gbcast_ref: (C2, G)        one-hot: broadcasts group stats back to channels
    # gamma_ref:  (C2, 1), beta_ref: (C2, 1)   GroupNorm affine
    # o_ref:      (C2, HW)       lane-dense output slab (already NCHW order)
    hp = x_ref.shape[0]
    c1 = x_ref.shape[-1]
    hw = ho * wo

    # ---- convolution: implicit im2col, k*k shifted matmuls on the MXU ----
    acc = None
    for kw in range(k):
        # Hoist the (rows, cols, C) -> (rows*cols, C) merge out of the kh loop:
        # one relayout per kw column offset instead of one per (kh, kw) tap.
        col = x_ref[:, kw:kw + wo, :].reshape(hp * wo, c1)        # (Hp*Wo, C1)
        for kh in range(k):
            # contiguous, sublane-aligned slice (kh*Wo is a multiple of 8)
            slab = col[kh * wo:kh * wo + hw, :]                   # (HW, C1)
            part = jnp.dot(slab, w_ref[kh * k + kw],
                           preferred_element_type=jnp.float32)    # (HW, C2)
            acc = part if acc is None else acc + part

    # Switch to the lane-dense (C2, HW) layout for stats / tail / store.
    y = acc.T                                                     # (C2, HW)

    # ---- GroupNorm statistics (per sample, per group over HW x cpg) ----
    s1 = jnp.sum(y, axis=1, keepdims=True)                        # (C2, 1)
    s2 = jnp.sum(y * y, axis=1, keepdims=True)                    # (C2, 1)
    stat_c = jnp.concatenate([s1, s2], axis=1)                    # (C2, 2)
    grp = jnp.dot(gsum_ref[...], stat_c,                          # (G, 2) = [sum, sumsq]
                  preferred_element_type=jnp.float32)

    inv_count = jnp.float32(1.0 / (hw * cpg))
    mean_g = grp[:, 0:1] * inv_count                              # (G, 1)
    var_g = jnp.maximum(grp[:, 1:2] * inv_count - mean_g * mean_g, 0.0)
    inv_std_g = lax.rsqrt(var_g + jnp.float32(eps))               # (G, 1)

    stat_g = jnp.concatenate([mean_g, inv_std_g], axis=1)         # (G, 2)
    bc = jnp.dot(gbcast_ref[...], stat_g,                         # (C2, 2) = [mean, inv_std]
                 preferred_element_type=jnp.float32)

    # ---- fused affine + SiLU:  z = y*scale + shift ;  out = z*sigmoid(z) ----
    scale_c = gamma_ref[...] * bc[:, 1:2]                         # (C2, 1)
    shift_c = beta_ref[...] - bc[:, 0:1] * scale_c                # (C2, 1)
    z = y * scale_c + shift_c                                     # (C2, HW)
    o_ref[...] = z * jax.nn.sigmoid(z)


def conv_gn_silu(x, weight, gamma, beta, *, k=3, s=1, p=None, d=1, eps=1e-5):
    """x: (N, C1, H, W) f32 NCHW.  weight: (C2, C1, k, k).  Returns NCHW."""
    assert d == 1 and s == 1, "fused kernel covers the k=3 / s=1 / 'same' config"
    if p is None:
        p = k // 2  # autopad ('same' for stride 1)
    N, C1, H, W = x.shape
    C2 = weight.shape[0]
    Ho = (H + 2 * p - k) // s + 1
    Wo = (W + 2 * p - k) // s + 1
    HW = Ho * Wo
    G = min(32, C2)
    assert C2 % G == 0
    CPG = C2 // G
    # layout requirements of the in-kernel implicit im2col / lane-dense store
    assert Wo % 8 == 0 and HW % 128 == 0, "spatial dims must be TPU-tile friendly"
    # TODO(synk): for large H*W tile the HW axis (grid axis "arbitrary", partial
    # group sums in scratch) so per-sample blocks also fit v7x's 64 MiB VMEM.

    Hp, Wp = H + 2 * p, W + 2 * p

    # ---- glue (all 1x-traffic): pad + NCHW->NHWC, reshape weight, tiny tables ----
    xp = jnp.pad(jnp.transpose(x, (0, 2, 3, 1)).astype(jnp.float32),
                 ((0, 0), (p, p), (p, p), (0, 0)))                    # (N, Hp, Wp, C1)
    w_t = jnp.transpose(weight, (2, 3, 1, 0)).reshape(k * k, C1, C2)  # taps-major
    w_t = w_t.astype(jnp.float32)

    ch = jnp.arange(C2)
    g_of_c = (ch[None, :] // CPG == jnp.arange(G)[:, None]).astype(jnp.float32)  # (G, C2)
    gsum = g_of_c                # (G, C2): aggregate channel stats into groups
    gbcast = g_of_c.T            # (C2, G): broadcast group stats back to channels

    gamma2 = gamma.reshape(C2, 1).astype(jnp.float32)
    beta2 = beta.reshape(C2, 1).astype(jnp.float32)

    kernel = functools.partial(_conv_gn_silu_kernel,
                               k=k, ho=Ho, wo=Wo, cpg=CPG, eps=eps)

    out = pl.pallas_call(
        kernel,
        out_shape=jax.ShapeDtypeStruct((N, C2, HW), jnp.float32),
        grid_spec=pltpu.PrefetchScalarGridSpec(
            num_scalar_prefetch=0,
            grid=(N,),
            in_specs=[
                pl.BlockSpec((None, Hp, Wp, C1), lambda i: (i, 0, 0, 0)),
                pl.BlockSpec((k * k, C1, C2), lambda i: (0, 0, 0)),
                pl.BlockSpec((G, C2), lambda i: (0, 0)),
                pl.BlockSpec((C2, G), lambda i: (0, 0)),
                pl.BlockSpec((C2, 1), lambda i: (0, 0)),
                pl.BlockSpec((C2, 1), lambda i: (0, 0)),
            ],
            out_specs=pl.BlockSpec((None, C2, HW), lambda i: (i, 0, 0)),
        ),
        compiler_params=pltpu.CompilerParams(
            dimension_semantics=("parallel",)),
    )(xp, w_t, gsum, gbcast, gamma2, beta2)

    # (N, C2, HW) is already NCHW order -> reshape only, no transpose.
    return out.reshape(N, C2, Ho, Wo)


def _reference(x, weight, gamma, beta, *, k=3, s=1, p=1, eps=1e-5):
    """Pure-JAX reference (conv -> GroupNorm -> SiLU)."""
    y = lax.conv_general_dilated(
        x, weight, window_strides=(s, s), padding=[(p, p), (p, p)],
        dimension_numbers=("NCHW", "OIHW", "NCHW"))
    N, C2, H, W = y.shape
    G = min(32, C2)
    yg = y.reshape(N, G, C2 // G, H, W)
    mean = yg.mean(axis=(2, 3, 4), keepdims=True)
    var = yg.var(axis=(2, 3, 4), keepdims=True)
    yn = ((yg - mean) / jnp.sqrt(var + eps)).reshape(N, C2, H, W)
    z = yn * gamma.reshape(1, C2, 1, 1) + beta.reshape(1, C2, 1, 1)
    return z * jax.nn.sigmoid(z)


if __name__ == "__main__":
    # synthetic config: Conv(c1=4, c2=64, k=3, s=1) -> GroupNorm(32, 64) -> SiLU
    N, C1, H, W = 2, 4, 16, 16
    C2, K_SZ = 64, 3

    key = jax.random.PRNGKey(0)
    kx, kw_, kg, kb = jax.random.split(key, 4)
    x = jax.random.normal(kx, (N, C1, H, W), dtype=jnp.float32)
    fan_in = C1 * K_SZ * K_SZ
    weight = jax.random.normal(kw_, (C2, C1, K_SZ, K_SZ), dtype=jnp.float32) / jnp.sqrt(fan_in)
    # non-trivial GroupNorm affine so the fused scale/shift path is exercised
    gamma = 1.0 + 0.1 * jax.random.normal(kg, (C2,), dtype=jnp.float32)
    beta = 0.1 * jax.random.normal(kb, (C2,), dtype=jnp.float32)

    out = conv_gn_silu(x, weight, gamma, beta, k=K_SZ, s=1)
    out = jax.block_until_ready(out)

    ref = _reference(x, weight, gamma, beta, k=K_SZ, s=1, p=1)
    assert out.shape == (N, C2, H, W)
    err = float(jnp.max(jnp.abs(out - ref)))
    assert err < 1e-4, f"mismatch vs pure-JAX reference: {err}"

    print("KERNEL_OK")
</pallas_src>

<mosaic_0001>
module attributes {stable_mosaic.version = 11 : i64} {
  func.func @_conv_gn_silu_kernel(%arg0: i32, %arg1: memref<1x18x18x4xf32, #tpu.memory_space<vmem>>, %arg2: memref<9x4x64xf32, #tpu.memory_space<vmem>>, %arg3: memref<32x64xf32, #tpu.memory_space<vmem>>, %arg4: memref<64x32xf32, #tpu.memory_space<vmem>>, %arg5: memref<64x1xf32, #tpu.memory_space<vmem>>, %arg6: memref<64x1xf32, #tpu.memory_space<vmem>>, %arg7: memref<1x64x256xf32, #tpu.memory_space<vmem>>) attributes {dimension_semantics = [#tpu.dimension_semantics<parallel>], iteration_bounds = array<i64: 2>, scalar_prefetch = 0 : i64, scratch_operands = 0 : i64, tpu.core_type = #tpu.core_type<tc>, window_params = [{transform_indices = @transform_0, window_bounds = array<i64: 1, 18, 18, 4>}, {pipeline_mode = #tpu.pipeline_mode<synchronous>, transform_indices = @transform_1, window_bounds = array<i64: 9, 4, 64>}, {pipeline_mode = #tpu.pipeline_mode<synchronous>, transform_indices = @transform_2, window_bounds = array<i64: 32, 64>}, {pipeline_mode = #tpu.pipeline_mode<synchronous>, transform_indices = @transform_3, window_bounds = array<i64: 64, 32>}, {pipeline_mode = #tpu.pipeline_mode<synchronous>, transform_indices = @transform_4, window_bounds = array<i64: 64, 1>}, {pipeline_mode = #tpu.pipeline_mode<synchronous>, transform_indices = @transform_5, window_bounds = array<i64: 64, 1>}, {transform_indices = @transform_6, window_bounds = array<i64: 1, 64, 256>}]} {
    %c0 = arith.constant 0 : index
    %c0_0 = arith.constant 0 : index
    %c0_1 = arith.constant 0 : index
    %c0_2 = arith.constant 0 : index
    %0 = vector.load %arg1[%c0, %c0_0, %c0_1, %c0_2] : memref<1x18x18x4xf32, #tpu.memory_space<vmem>>, vector<1x18x16x4xf32>
    %1 = vector.shape_cast %0 : vector<1x18x16x4xf32> to vector<18x16x4xf32>
    %2 = vector.shape_cast %1 : vector<18x16x4xf32> to vector<288x4xf32>
    %3 = vector.extract_strided_slice %2 {offsets = [0, 0], sizes = [256, 4], strides = [1, 1]} : vector<288x4xf32> to vector<256x4xf32>
    %c0_3 = arith.constant 0 : index
    %c0_4 = arith.constant 0 : index
    %c0_5 = arith.constant 0 : index
    %4 = vector.load %arg2[%c0_3, %c0_4, %c0_5] : memref<9x4x64xf32, #tpu.memory_space<vmem>>, vector<1x4x64xf32>
    %5 = vector.shape_cast %4 : vector<1x4x64xf32> to vector<4x64xf32>
    %cst = arith.constant dense<0.000000e+00> : vector<256x64xf32>
    %6 = tpu.matmul %3, %5, %cst {dimension_numbers = #tpu.dot_dimension_numbers<[1], [0], [0], [1], [0, 0, 1, 1], [], []>} : vector<256x4xf32>, vector<4x64xf32>, vector<256x64xf32> -> vector<256x64xf32>
    %7 = vector.extract_strided_slice %2 {offsets = [16, 0], sizes = [256, 4], strides = [1, 1]} : vector<288x4xf32> to vector<256x4xf32>
    %c3 = arith.constant 3 : index
    %c0_6 = arith.constant 0 : index
    %c0_7 = arith.constant 0 : index
    %8 = vector.load %arg2[%c3, %c0_6, %c0_7] : memref<9x4x64xf32, #tpu.memory_space<vmem>>, vector<1x4x64xf32>
    %9 = vector.shape_cast %8 : vector<1x4x64xf32> to vector<4x64xf32>
    %cst_8 = arith.constant dense<0.000000e+00> : vector<256x64xf32>
    %10 = tpu.matmul %7, %9, %cst_8 {dimension_numbers = #tpu.dot_dimension_numbers<[1], [0], [0], [1], [0, 0, 1, 1], [], []>} : vector<256x4xf32>, vector<4x64xf32>, vector<256x64xf32> -> vector<256x64xf32>
    %11 = arith.addf %6, %10 : vector<256x64xf32>
    %12 = vector.extract_strided_slice %2 {offsets = [32, 0], sizes = [256, 4], strides = [1, 1]} : vector<288x4xf32> to vector<256x4xf32>
    %c6 = arith.constant 6 : index
    %c0_9 = arith.constant 0 : index
    %c0_10 = arith.constant 0 : index
    %13 = vector.load %arg2[%c6, %c0_9, %c0_10] : memref<9x4x64xf32, #tpu.memory_space<vmem>>, vector<1x4x64xf32>
    %14 = vector.shape_cast %13 : vector<1x4x64xf32> to vector<4x64xf32>
    %cst_11 = arith.constant dense<0.000000e+00> : vector<256x64xf32>
    %15 = tpu.matmul %12, %14, %cst_11 {dimension_numbers = #tpu.dot_dimension_numbers<[1], [0], [0], [1], [0, 0, 1, 1], [], []>} : vector<256x4xf32>, vector<4x64xf32>, vector<256x64xf32> -> vector<256x64xf32>
    %16 = arith.addf %11, %15 : vector<256x64xf32>
    %c0_12 = arith.constant 0 : index
    %c0_13 = arith.constant 0 : index
    %c1 = arith.constant 1 : index
    %c0_14 = arith.constant 0 : index
    %17 = vector.load %arg1[%c0_12, %c0_13, %c1, %c0_14] : memref<1x18x18x4xf32, #tpu.memory_space<vmem>>, vector<1x18x16x4xf32>
    %18 = vector.shape_cast %17 : vector<1x18x16x4xf32> to vector<18x16x4xf32>
    %19 = vector.shape_cast %18 : vector<18x16x4xf32> to vector<288x4xf32>
    %20 = vector.extract_strided_slice %19 {offsets = [0, 0], sizes = [256, 4], strides = [1, 1]} : vector<288x4xf32> to vector<256x4xf32>
    %c1_15 = arith.constant 1 : index
    %c0_16 = arith.constant 0 : index
    %c0_17 = arith.constant 0 : index
    %21 = vector.load %arg2[%c1_15, %c0_16, %c0_17] : memref<9x4x64xf32, #tpu.memory_space<vmem>>, vector<1x4x64xf32>
    %22 = vector.shape_cast %21 : vector<1x4x64xf32> to vector<4x64xf32>
    %cst_18 = arith.constant dense<0.000000e+00> : vector<256x64xf32>
    %23 = tpu.matmul %20, %22, %cst_18 {dimension_numbers = #tpu.dot_dimension_numbers<[1], [0], [0], [1], [0, 0, 1, 1], [], []>} : vector<256x4xf32>, vector<4x64xf32>, vector<256x64xf32> -> vector<256x64xf32>
    %24 = arith.addf %16, %23 : vector<256x64xf32>
    %25 = vector.extract_strided_slice %19 {offsets = [16, 0], sizes = [256, 4], strides = [1, 1]} : vector<288x4xf32> to vector<256x4xf32>
    %c4 = arith.constant 4 : index
    %c0_19 = arith.constant 0 : index
    %c0_20 = arith.constant 0 : index
    %26 = vector.load %arg2[%c4, %c0_19, %c0_20] : memref<9x4x64xf32, #tpu.memory_space<vmem>>, vector<1x4x64xf32>
    %27 = vector.shape_cast %26 : vector<1x4x64xf32> to vector<4x64xf32>
    %cst_21 = arith.constant dense<0.000000e+00> : vector<256x64xf32>
    %28 = tpu.matmul %25, %27, %cst_21 {dimension_numbers = #tpu.dot_dimension_numbers<[1], [0], [0], [1], [0, 0, 1, 1], [], []>} : vector<256x4xf32>, vector<4x64xf32>, vector<256x64xf32> -> vector<256x64xf32>
    %29 = arith.addf %24, %28 : vector<256x64xf32>
    %30 = vector.extract_strided_slice %19 {offsets = [32, 0], sizes = [256, 4], strides = [1, 1]} : vector<288x4xf32> to vector<256x4xf32>
    %c7 = arith.constant 7 : index
    %c0_22 = arith.constant 0 : index
    %c0_23 = arith.constant 0 : index
    %31 = vector.load %arg2[%c7, %c0_22, %c0_23] : memref<9x4x64xf32, #tpu.memory_space<vmem>>, vector<1x4x64xf32>
    %32 = vector.shape_cast %31 : vector<1x4x64xf32> to vector<4x64xf32>
    %cst_24 = arith.constant dense<0.000000e+00> : vector<256x64xf32>
    %33 = tpu.matmul %30, %32, %cst_24 {dimension_numbers = #tpu.dot_dimension_numbers<[1], [0], [0], [1], [0, 0, 1, 1], [], []>} : vector<256x4xf32>, vector<4x64xf32>, vector<256x64xf32> -> vector<256x64xf32>
    %34 = arith.addf %29, %33 : vector<256x64xf32>
    %c0_25 = arith.constant 0 : index
    %c0_26 = arith.constant 0 : index
    %c2 = arith.constant 2 : index
    %c0_27 = arith.constant 0 : index
    %35 = vector.load %arg1[%c0_25, %c0_26, %c2, %c0_27] : memref<1x18x18x4xf32, #tpu.memory_space<vmem>>, vector<1x18x16x4xf32>
    %36 = vector.shape_cast %35 : vector<1x18x16x4xf32> to vector<18x16x4xf32>
    %37 = vector.shape_cast %36 : vector<18x16x4xf32> to vector<288x4xf32>
    %38 = vector.extract_strided_slice %37 {offsets = [0, 0], sizes = [256, 4], strides = [1, 1]} : vector<288x4xf32> to vector<256x4xf32>
    %c2_28 = arith.constant 2 : index
    %c0_29 = arith.constant 0 : index
    %c0_30 = arith.constant 0 : index
    %39 = vector.load %arg2[%c2_28, %c0_29, %c0_30] : memref<9x4x64xf32, #tpu.memory_space<vmem>>, vector<1x4x64xf32>
    %40 = vector.shape_cast %39 : vector<1x4x64xf32> to vector<4x64xf32>
    %cst_31 = arith.constant dense<0.000000e+00> : vector<256x64xf32>
    %41 = tpu.matmul %38, %40, %cst_31 {dimension_numbers = #tpu.dot_dimension_numbers<[1], [0], [0], [1], [0, 0, 1, 1], [], []>} : vector<256x4xf32>, vector<4x64xf32>, vector<256x64xf32> -> vector<256x64xf32>
    %42 = arith.addf %34, %41 : vector<256x64xf32>
    %43 = vector.extract_strided_slice %37 {offsets = [16, 0], sizes = [256, 4], strides = [1, 1]} : vector<288x4xf32> to vector<256x4xf32>
    %c5 = arith.constant 5 : index
    %c0_32 = arith.constant 0 : index
    %c0_33 = arith.constant 0 : index
    %44 = vector.load %arg2[%c5, %c0_32, %c0_33] : memref<9x4x64xf32, #tpu.memory_space<vmem>>, vector<1x4x64xf32>
    %45 = vector.shape_cast %44 : vector<1x4x64xf32> to vector<4x64xf32>
    %cst_34 = arith.constant dense<0.000000e+00> : vector<256x64xf32>
    %46 = tpu.matmul %43, %45, %cst_34 {dimension_numbers = #tpu.dot_dimension_numbers<[1], [0], [0], [1], [0, 0, 1, 1], [], []>} : vector<256x4xf32>, vector<4x64xf32>, vector<256x64xf32> -> vector<256x64xf32>
    %47 = arith.addf %42, %46 : vector<256x64xf32>
    %48 = vector.extract_strided_slice %37 {offsets = [32, 0], sizes = [256, 4], strides = [1, 1]} : vector<288x4xf32> to vector<256x4xf32>
    %c8 = arith.constant 8 : index
    %c0_35 = arith.constant 0 : index
    %c0_36 = arith.constant 0 : index
    %49 = vector.load %arg2[%c8, %c0_35, %c0_36] : memref<9x4x64xf32, #tpu.memory_space<vmem>>, vector<1x4x64xf32>
    %50 = vector.shape_cast %49 : vector<1x4x64xf32> to vector<4x64xf32>
    %cst_37 = arith.constant dense<0.000000e+00> : vector<256x64xf32>
    %51 = tpu.matmul %48, %50, %cst_37 {dimension_numbers = #tpu.dot_dimension_numbers<[1], [0], [0], [1], [0, 0, 1, 1], [], []>} : vector<256x4xf32>, vector<4x64xf32>, vector<256x64xf32> -> vector<256x64xf32>
    %52 = arith.addf %47, %51 : vector<256x64xf32>
    %53 = tpu.transpose %52, [1, 0] : vector<256x64xf32> -> vector<64x256xf32>
    %cst_38 = arith.constant dense<0.000000e+00> : vector<64xf32>
    %54 = vector.multi_reduction <add>, %53, %cst_38 [1] : vector<64x256xf32> to vector<64xf32>
    %55 = vector.shape_cast %54 : vector<64xf32> to vector<64x1xf32>
    %56 = arith.mulf %53, %53 : vector<64x256xf32>
    %cst_39 = arith.constant dense<0.000000e+00> : vector<64xf32>
    %57 = vector.multi_reduction <add>, %56, %cst_39 [1] : vector<64x256xf32> to vector<64xf32>
    %58 = vector.shape_cast %57 : vector<64xf32> to vector<64x1xf32>
    %59 = tpu.concatenate %55, %58 in 1 : vector<64x1xf32>, vector<64x1xf32> -> vector<64x2xf32>
    %c0_40 = arith.constant 0 : index
    %c0_41 = arith.constant 0 : index
    %60 = vector.load %arg3[%c0_40, %c0_41] : memref<32x64xf32, #tpu.memory_space<vmem>>, vector<32x64xf32>
    %cst_42 = arith.constant dense<0.000000e+00> : vector<32x2xf32>
    %61 = tpu.matmul %60, %59, %cst_42 {dimension_numbers = #tpu.dot_dimension_numbers<[1], [0], [0], [1], [0, 0, 1, 1], [], []>} : vector<32x64xf32>, vector<64x2xf32>, vector<32x2xf32> -> vector<32x2xf32>
    %62 = vector.extract_strided_slice %61 {offsets = [0, 0], sizes = [32, 1], strides = [1, 1]} : vector<32x2xf32> to vector<32x1xf32>
    %cst_43 = arith.constant 0.001953125 : f32
    %63 = vector.broadcast %cst_43 : f32 to vector<32x1xf32>
    %64 = arith.mulf %62, %63 : vector<32x1xf32>
    %65 = vector.extract_strided_slice %61 {offsets = [0, 1], sizes = [32, 1], strides = [1, 1]} : vector<32x2xf32> to vector<32x1xf32>
    %cst_44 = arith.constant 0.001953125 : f32
    %66 = vector.broadcast %cst_44 : f32 to vector<32x1xf32>
    %67 = arith.mulf %65, %66 : vector<32x1xf32>
    %68 = arith.mulf %64, %64 : vector<32x1xf32>
    %69 = arith.subf %67, %68 : vector<32x1xf32>
    %cst_45 = arith.constant 0.000000e+00 : f32
    %70 = vector.broadcast %cst_45 : f32 to vector<32x1xf32>
    %71 = arith.maximumf %69, %70 : vector<32x1xf32>
    %cst_46 = arith.constant 9.99999974E-6 : f32
    %72 = vector.broadcast %cst_46 : f32 to vector<32x1xf32>
    %73 = arith.addf %71, %72 : vector<32x1xf32>
    %74 = math.rsqrt %73 : vector<32x1xf32>
    %75 = tpu.concatenate %64, %74 in 1 : vector<32x1xf32>, vector<32x1xf32> -> vector<32x2xf32>
    %c0_47 = arith.constant 0 : index
    %c0_48 = arith.constant 0 : index
    %76 = vector.load %arg4[%c0_47, %c0_48] : memref<64x32xf32, #tpu.memory_space<vmem>>, vector<64x32xf32>
    %cst_49 = arith.constant dense<0.000000e+00> : vector<64x2xf32>
    %77 = tpu.matmul %76, %75, %cst_49 {dimension_numbers = #tpu.dot_dimension_numbers<[1], [0], [0], [1], [0, 0, 1, 1], [], []>} : vector<64x32xf32>, vector<32x2xf32>, vector<64x2xf32> -> vector<64x2xf32>
    %c0_50 = arith.constant 0 : index
    %c0_51 = arith.constant 0 : index
    %78 = vector.load %arg5[%c0_50, %c0_51] : memref<64x1xf32, #tpu.memory_space<vmem>>, vector<64x1xf32>
    %79 = vector.extract_strided_slice %77 {offsets = [0, 1], sizes = [64, 1], strides = [1, 1]} : vector<64x2xf32> to vector<64x1xf32>
    %80 = arith.mulf %78, %79 : vector<64x1xf32>
    %c0_52 = arith.constant 0 : index
    %c0_53 = arith.constant 0 : index
    %81 = vector.load %arg6[%c0_52, %c0_53] : memref<64x1xf32, #tpu.memory_space<vmem>>, vector<64x1xf32>
    %82 = vector.extract_strided_slice %77 {offsets = [0, 0], sizes = [64, 1], strides = [1, 1]} : vector<64x2xf32> to vector<64x1xf32>
    %83 = arith.mulf %82, %80 : vector<64x1xf32>
    %84 = arith.subf %81, %83 : vector<64x1xf32>
    %85 = vector.broadcast %80 : vector<64x1xf32> to vector<64x256xf32>
    %86 = arith.mulf %53, %85 : vector<64x256xf32>
    %87 = vector.broadcast %84 : vector<64x1xf32> to vector<64x256xf32>
    %88 = arith.addf %86, %87 : vector<64x256xf32>
    %89 = arith.negf %88 : vector<64x256xf32>
    %90 = math.exp %89 : vector<64x256xf32>
    %cst_54 = arith.constant 1.000000e+00 : f32
    %91 = vector.broadcast %cst_54 : f32 to vector<64x256xf32>
    %92 = arith.addf %91, %90 : vector<64x256xf32>
    %93 = arith.divf %91, %92 : vector<64x256xf32>
    %94 = arith.mulf %88, %93 : vector<64x256xf32>
    %c0_55 = arith.constant 0 : index
    %c0_56 = arith.constant 0 : index
    %c0_57 = arith.constant 0 : index
    %95 = vector.load %arg7[%c0_55, %c0_56, %c0_57] : memref<1x64x256xf32, #tpu.memory_space<vmem>>, vector<1x64x256xf32>
    %96 = vector.shape_cast %95 : vector<1x64x256xf32> to vector<64x256xf32>
    %97 = vector.shape_cast %94 : vector<64x256xf32> to vector<1x64x256xf32>
    tpu.vector_store %arg7[%c0_55, %c0_56, %c0_57], %97 {strides = array<i32>} : memref<1x64x256xf32, #tpu.memory_space<vmem>>, vector<1x64x256xf32>,
    return
  }
  func.func @transform_0(%arg0: i32) -> (i32, i32, i32, i32) {
    %c0_i32 = arith.constant 0 : i32
    %c0_i32_0 = arith.constant 0 : i32
    %c0_i32_1 = arith.constant 0 : i32
    %c0_i32_2 = arith.constant 0 : i32
    return %arg0, %c0_i32, %c0_i32_0, %c0_i32_1 : i32, i32, i32, i32
  }
  func.func @transform_1(%arg0: i32) -> (i32, i32, i32) {
    %c0_i32 = arith.constant 0 : i32
    %c0_i32_0 = arith.constant 0 : i32
    %c0_i32_1 = arith.constant 0 : i32
    %c0_i32_2 = arith.constant 0 : i32
    return %c0_i32, %c0_i32_0, %c0_i32_1 : i32, i32, i32
  }
  func.func @transform_2(%arg0: i32) -> (i32, i32) {
    %c0_i32 = arith.constant 0 : i32
    %c0_i32_0 = arith.constant 0 : i32
    %c0_i32_1 = arith.constant 0 : i32
    return %c0_i32, %c0_i32_0 : i32, i32
  }
  func.func @transform_3(%arg0: i32) -> (i32, i32) {
    %c0_i32 = arith.constant 0 : i32
    %c0_i32_0 = arith.constant 0 : i32
    %c0_i32_1 = arith.constant 0 : i32
    return %c0_i32, %c0_i32_0 : i32, i32
  }
  func.func @transform_4(%arg0: i32) -> (i32, i32) {
    %c0_i32 = arith.constant 0 : i32
    %c0_i32_0 = arith.constant 0 : i32
    %c0_i32_1 = arith.constant 0 : i32
    return %c0_i32, %c0_i32_0 : i32, i32
  }
  func.func @transform_5(%arg0: i32) -> (i32, i32) {
    %c0_i32 = arith.constant 0 : i32
    %c0_i32_0 = arith.constant 0 : i32
    %c0_i32_1 = arith.constant 0 : i32
    return %c0_i32, %c0_i32_0 : i32, i32
  }
  func.func @transform_6(%arg0: i32) -> (i32, i32, i32) {
    %c0_i32 = arith.constant 0 : i32
    %c0_i32_0 = arith.constant 0 : i32
    %c0_i32_1 = arith.constant 0 : i32
    return %arg0, %c0_i32, %c0_i32_0 : i32, i32, i32
  }
}

</mosaic_0001>

<bundles_post_ra>
// kernel: tpu_custom_call.1
= control target key start
LH: loop header
LB: loop body
LE: loop exit
PB: predicated region body
PF: predicated region fallthrough
CT: control target
= control target key end

     0   :  { %11 = vsyncpa [#allocation3], 0  ;;  %s6781_s0 = inlined_call_operand.vmem [shape: f32[2,18,18,4], index: 0, kind: input, shape index: {}]   ;;  %s6782_s1 = inlined_call_operand.vmem [shape: f32[9,4,64], index: 1, kind: input, shape index: {}]   ;;  %s6783_s2 = inlined_call_operand.vmem [shape: f32[32,64], index: 2, kind: input, shape index: {}]   ;;  %s6784_s3 = inlined_call_operand.vmem [shape: f32[64,32], index: 3, kind: input, shape index: {}]   ;;  %s6785_s4 = inlined_call_operand.vmem [shape: f32[64,1], index: 4, kind: input, shape index: {}]   ;;  %s6786_s5 = inlined_call_operand.vmem [shape: f32[64,1], index: 5, kind: input, shape index: {}]   ;;  %s6787_s6 = inlined_call_operand.hbm [shape: f32[2,64,256], index: 6, kind: output, shape index: {}]  }
   0x1   :  { %13 = vsyncpa [#allocation3 + $0x1], 0  ;;  %s5450_s21 = smov 0   ;;  %s5452_s22 = smov 0  }
   0x2   :  { %s5454_s23 = smov 0   ;;  %s5456_s24 = smov 0  }
   0x3 LB: > { %s5471_s25 = sadd.s32 4294967295, %s5407_s24   ;;  %s3786_s26 = sadd.s32 4294967294, %s5407_s24   ;;  %s5407_s24 = sphi %s5456_s24, %s6840_s24   ;;  %s5403_s23 = sphi %s5454_s23, %s6839_s23   ;;  %s5399_s22 = sphi %s5452_s22, %s6838_s22   ;;  %s5395_s21 = sphi %s5450_s21, %s6837_s21  }
   0x4   : > { %s5475_s27 = sadd.s32 1, %s5407_s24   ;;  %s157_s28 = sadd.s32 1, %s5403_s23 }
   0x5   : > { %s154_s29 = ssub.s32 %s5407_s24, %s5475_s27  ;;  %p167_p0 = scmp.ne.s32.totalorder %s5403_s23, %s5399_s22 }
   0x6   : > { %p155_p1 = scmp.eq.s32.totalorder %s154_s29, 0  ;;  %p168_p2 = scmp.eq.s32.totalorder %s5471_s25, 1 }
   0x7   : > { %p173_p3 = scmp.ne.s32.totalorder %s5399_s22, %s5395_s21  ;;  %p174_p4 = scmp.eq.s32.totalorder %s3786_s26, 1 }
   0x8   : > { %s5486_s30 = scalar_select %p155_p1, %s5403_s23, %s157_s28  }
   0x9   : > { %p5488_p5 = por %p168_p2, %p167_p0  ;;  %p5492_p6 = por %p174_p4, %p173_p3 }
   0xa   : > { %p3789_p7 = scmp.ge.s32.totalorder %s5407_s24, 1  ;;  %p215_p8 = scmp.lt.s32.totalorder %s5407_s24, 3 }
   0xc   : > { %p216_p9 = pnand %p3789_p7, %p215_p8 }
   0xe   : > { %219 = sbr.rel (%p216_p9) target bundleno = 1727 (0x6bf), region = 44 }
  0x15   : > { %v3792_v0 = vld [vmem:[%s6782_s1 + $0xc] sm:$0xf]  ;;  %vm386_vm0 = vcmask 1043456   ;;  %v5504_v1 = vld [vmem:[%s6782_s1 + $0x10] sm:$0xf]  ;;  %p245_p10 = scmp.lt.s32.totalorder %s5471_s25, 1 }
  0x16   : > { %4452 = vmatprep.subr.msk.mxu1 %vm386_vm0, %v3792_v0  ;;  %4652 = vmatprep.subr.msk.mxu0 %vm386_vm0, %v5504_v1  ;;  %v3961_v2 = vld [vmem:[%s6782_s1 + $0x1c] sm:$0xf]  ;;  %v286_v3 = vld [vmem:[%s6782_s1] sm:$0xf]  ;;  %vm289_vm1 = vcmask 31744   ;;  %vm3118_vm2 = vcmask 523264  }
  0x17   : > { %4453 = vmatpush3.msk.msra.mxu1 %vm386_vm0, %v3792_v0  ;;  %s246_s17 = scalar_select %p245_p10, %s5471_s25, 1  ;;  %4653 = vmatpush3.msk.msra.mxu0 %vm386_vm0, %v5504_v1  ;;  %v5556_v10 = vld [vmem:[%s6782_s1 + $0x8] sm:$0xf]  ;;  %v5561_v11 = vld [vmem:[%s6782_s1 + $0x18] sm:$0xf]  ;;  %vm3105_vm3 = vcmask 7168  }
  0x18   : > { %4702 = vmatprep.subr.msk.mxu0 %vm386_vm0, %v3961_v2  ;;  %4502 = vmatprep.subr.msk.mxu1 %vm386_vm0, %v286_v3  ;;  %v5779_v53 = vld [vmem:[%s6782_s1 + $0x14] sm:$0xf]  ;;  %v5853_v63 = vld [vmem:[%s6782_s1 + $0x4] sm:$0xf]  ;;  %s5409_s10 = smov 1   ;;  %vm3268_vm4 = vcmask 261120  }
  0x19   : > { %s5226_s18 = smul.u32 432, %s246_s17  ;;  %s5411_s12 = smov 127  }
  0x1a   : > { %s242_s15 = sand.u32 1, %s5399_s22   ;;  %s5412_s9 = smov [#allocation2]  }
  0x1b   : > { %s5525_s26 = scalar_lea.vmem %s6781_s0, %s5226_s18  ;;  %s3790_s16 = sshll.u32 %s242_s15, 7 }
  0x1c   : > { %v5528_v4 = vld [vmem:[%s5525_s26 + $0x18] sm:$0xff]  ;;  %v5534_v6 = vld [vmem:[%s5525_s26 + $0x20] sm:$0xff]  ;;  %v5544_v8 = vld [vmem:[%s5525_s26 + $0x30] sm:$0xff]  ;;  %s6695_s17 = scalar_lea.vmem [#allocation2], %s3790_s16  ;;  %s4130_s18 = sshll.u32 %s5471_s25, 11 }
  0x1d   : > { %v5531_v5 = vld [vmem:[%s5525_s26 + $0x19] sm:$0xff]  ;;  %4454 = vmatprep.mubr.msk.f32.mxu1 %vm289_vm1, %v5528_v4  ;;  %v5541_v7 = vld [vmem:[%s5525_s26 + $0x21] sm:$0xff]  ;;  %v5547_v9 = vld [vmem:[%s5525_s26 + $0x31] sm:$0xff]  ;;  %s3724_s19 = sshll.u32 %s6695_s17, 4  ;;  %s6731_s28 = scalar_lea.hbm %s6787_s6, %s4130_s18  ;;  %s6733_s19 = int_to_ptr.vmem [resolvable:$true] %s3724_s19 }
  0x1e   : > { %4654 = vmatprep.mubr.msk.f32.mxu0 %vm289_vm1, %v5531_v5  ;;  %4455 = vmatmul.mubr.msk.f32.vlgmr.msra.gmra.mrb[0].mxu1 %vm289_vm1, %v5534_v6  ;;  %v5567_v12 = vld [vmem:[%s5525_s26 + $0x38] sm:$0xff]  ;;  %v5575_v14 = vld [vmem:[%s5525_s26 + $0x48] sm:$0xff]  ;;  %v5594_v16 = vld [vmem:[%s5525_s26 + $0x50] sm:$0xff]  ;;  %s6740_s25 = scalar_lea.sflag [#allocation3], %s242_s15  ;;  %s5345_s29 = scalar_lea.vmem %s6733_s19, 2048 }
  0x1f   : > { %4655 = vmatmul.mubr.msk.f32.vlgmr.msra.gmra.mrb[0].mxu0 %vm289_vm1, %v5541_v7  ;;  %4457 = vmatprep.mubr.msk.f32.mxu1 %vm289_vm1, %v5544_v8  ;;  %v5570_v13 = vld [vmem:[%s5525_s26 + $0x39] sm:$0xff]  ;;  %v5578_v15 = vld [vmem:[%s5525_s26 + $0x49] sm:$0xff]  ;;  %v5597_v17 = vld [vmem:[%s5525_s26 + $0x51] sm:$0xff]  ;;  %p5346_p11 = scmp.ne.s32.totalorder %s6733_s19, %s5345_s29 }
  0x20   : > { %4703 = vmatpush3.msk.msra.mxu0 %vm386_vm0, %v3961_v2  ;;  %4657 = vmatprep.mubr.msk.f32.mxu0 %vm289_vm1, %v5547_v9  ;;  %v5600_v18 = vld [vmem:[%s5525_s26 + $0x60] sm:$0xff]  ;;  %v5614_v20 = vld [vmem:[%s5525_s26 + $0x68] sm:$0xff]  ;;  %v5620_v22 = vld [vmem:[%s5525_s26 + $0x78] sm:$0xff] }
  0x21   : > { %4503 = vmatpush3.msk.msra.mxu1 %vm386_vm0, %v286_v3  ;;  %4752 = vmatprep.subr.msk.mxu0 %vm386_vm0, %v5556_v10  ;;  %v5603_v19 = vld [vmem:[%s5525_s26 + $0x61] sm:$0xff]  ;;  %v5617_v21 = vld [vmem:[%s5525_s26 + $0x69] sm:$0xff]  ;;  %v5623_v23 = vld [vmem:[%s5525_s26 + $0x79] sm:$0xff]  ;;  %p5347_p12 = pnand %p5346_p11, %p5488_p5 }
  0x22   : > { %4552 = vmatprep.subr.msk.mxu1 %vm386_vm0, %v5561_v11  ;;  %4458 = vmatmul.mubr.msk.f32.gmra.mrb[2].mxu1 %vm289_vm1, %v5567_v12  ;;  %v5634_v24 = vld [vmem:[%s5525_s26 + $0x80] sm:$0xff]  ;;  %v5640_v26 = vld [vmem:[%s5525_s26 + $0x90] sm:$0xff]  ;;  %v5654_v28 = vld [vmem:[%s5525_s26 + $0x98] sm:$0xff] }
  0x23   : > { %4658 = vmatmul.mubr.msk.f32.gmra.mrb[2].mxu0 %vm289_vm1, %v5570_v13  ;;  %4460 = vmatprep.mubr.msk.f32.mxu1 %vm289_vm1, %v5575_v14  ;;  %v5637_v25 = vld [vmem:[%s5525_s26 + $0x81] sm:$0xff]  ;;  %v5643_v27 = vld [vmem:[%s5525_s26 + $0x91] sm:$0xff]  ;;  %v5657_v29 = vld [vmem:[%s5525_s26 + $0x99] sm:$0xff]  ;;  %p5348_p13 = pneg %p5347_p12 }
  0x24   : > { %4660 = vmatprep.mubr.msk.f32.mxu0 %vm289_vm1, %v5578_v15  ;;  %v5660_v30 = vld [vmem:[%s5525_s26 + $0xa8] sm:$0xff]  ;;  %v5674_v32 = vld [vmem:[%s5525_s26 + $0xb0] sm:$0xff]  ;;  %v5680_v34 = vld [vmem:[%s5525_s26 + $0xc0] sm:$0xff] }
  0x25   : > { %v5663_v31 = vld [vmem:[%s5525_s26 + $0xa9] sm:$0xff]  ;;  %v5677_v33 = vld [vmem:[%s5525_s26 + $0xb1] sm:$0xff]  ;;  %v5683_v35 = vld [vmem:[%s5525_s26 + $0xc1] sm:$0xff] }
  0x26   : > { %4461 = vmatmul.mubr.msk.f32.gmra.mrb[4].mxu1 %vm289_vm1, %v5594_v16  ;;  %v5694_v36 = vld [vmem:[%s5525_s26 + $0xc8] sm:$0xff]  ;;  %v5700_v38 = vld [vmem:[%s5525_s26 + $0xd8] sm:$0xff]  ;;  %v5714_v40 = vld [vmem:[%s5525_s26 + $0xe0] sm:$0xff] }
  0x27   : > { %4661 = vmatmul.mubr.msk.f32.gmra.mrb[4].mxu0 %vm289_vm1, %v5597_v17  ;;  %4463 = vmatprep.mubr.msk.f32.mxu1 %vm289_vm1, %v5600_v18  ;;  %v5697_v37 = vld [vmem:[%s5525_s26 + $0xc9] sm:$0xff]  ;;  %v5703_v39 = vld [vmem:[%s5525_s26 + $0xd9] sm:$0xff]  ;;  %v5717_v41 = vld [vmem:[%s5525_s26 + $0xe1] sm:$0xff] }
  0x28   : > { %4663 = vmatprep.mubr.msk.f32.mxu0 %vm289_vm1, %v5603_v19  ;;  %v5720_v42 = vld [vmem:[%s5525_s26 + $0xf0] sm:$0xff]  ;;  %v5734_v44 = vld [vmem:[%s5525_s26 + $0xf8] sm:$0xff]  ;;  %v5740_v46 = vld [vmem:[%s5525_s26 + $0x108] sm:$0xff] }
  0x29   : > { %v5723_v43 = vld [vmem:[%s5525_s26 + $0xf1] sm:$0xff]  ;;  %v5737_v45 = vld [vmem:[%s5525_s26 + $0xf9] sm:$0xff]  ;;  %v5743_v47 = vld [vmem:[%s5525_s26 + $0x109] sm:$0xff] }
  0x2a   : > { %4464 = vmatmul.mubr.msk.f32.gmra.mrb[6].mxu1 %vm289_vm1, %v5614_v20  ;;  %6811 = vst [vmem:[#allocation5_spill] sm:$0xff] %v5737_v45  ;;  %6812 = vst [vmem:[#allocation6_spill] sm:$0xff] %v5743_v47  ;;  %v5754_v48 = vld [vmem:[%s5525_s26 + $0x110] sm:$0xff]  ;;  %v5760_v50 = vld [vmem:[%s5525_s26 + $0x120] sm:$0xff] }
  0x2b   : > { %4664 = vmatmul.mubr.msk.f32.gmra.mrb[6].mxu0 %vm289_vm1, %v5617_v21  ;;  %4466 = vmatprep.mubr.msk.f32.mxu1 %vm289_vm1, %v5620_v22  ;;  %v5757_v49 = vld [vmem:[%s5525_s26 + $0x111] sm:$0xff]  ;;  %v5771_v51 = vld [vmem:[%s5525_s26 + $0x128] sm:$0xff]  ;;  %v5790_v54 = vld [vmem:[%s5525_s26 + $0x140] sm:$0xff] }
  0x2c   : > { %4666 = vmatprep.mubr.msk.f32.mxu0 %vm289_vm1, %v5623_v23  ;;  %6813 = vst [vmem:[#allocation7_spill] sm:$0xff] %v5757_v49  ;;  %v5774_v52 = vld [vmem:[%s5525_s26 + $0x138] sm:$0xff]  ;;  %v5795_v55 = vld [vmem:[%s5525_s26 + $0x150] sm:$0xff]  ;;  %v5811_v57 = vld [vmem:[%s5525_s26 + $0x168] sm:$0xff] }
  0x2d   : > { %v5808_v56 = vld [vmem:[%s5525_s26 + $0x158] sm:$0xff]  ;;  %v5822_v58 = vld [vmem:[%s5525_s26 + $0x170] sm:$0xff]  ;;  %v5825_v59 = vld [vmem:[%s5525_s26 + $0x180] sm:$0xff] }
  0x2e   : > { %4467 = vmatmul.mubr.msk.f32.gmra.mrb[8].mxu1 %vm289_vm1, %v5634_v24  ;;  %v5836_v60 = vld [vmem:[%s5525_s26 + $0x188] sm:$0xff]  ;;  %v250_v61 = vld [vmem:[%s5525_s26] sm:$0xff] }
  0x2f   : > { %4667 = vmatmul.mubr.msk.f32.gmra.mrb[8].mxu0 %vm289_vm1, %v5637_v25  ;;  %4469 = vmatprep.mubr.msk.f32.mxu1 %vm289_vm1, %v5640_v26  ;;  %v251_v62 = vld [vmem:[%s5525_s26 + $0x8] sm:$0xff]  ;;  %v5902_v3 = vld [vmem:[%s5525_s26 + $0x139] sm:$0xff] }
  0x30   : > { %4669 = vmatprep.mubr.msk.f32.mxu0 %vm289_vm1, %v5643_v27  ;;  %v5888_v0 = vld [vmem:[%s5525_s26 + $0x121] sm:$0xff]  ;;  %v5899_v2 = vld [vmem:[%s5525_s26 + $0x129] sm:$0xff]  ;;  %6816 = vst [vmem:[#allocation10_spill] sm:$0xff] %v5902_v3 }
  0x31   : > { %6814 = vst [vmem:[#allocation8_spill] sm:$0xff] %v5888_v0  ;;  %6815 = vst [vmem:[#allocation9_spill] sm:$0xff] %v5899_v2 }
  0x32   : > { %4470 = vmatmul.mubr.msk.f32.gmra.mrb[10].mxu1 %vm289_vm1, %v5654_v28 }
  0x33   : > { %4670 = vmatmul.mubr.msk.f32.gmra.mrb[10].mxu0 %vm289_vm1, %v5657_v29  ;;  %4472 = vmatprep.mubr.msk.f32.mxu1 %vm289_vm1, %v5660_v30 }
  0x34   : > { %4672 = vmatprep.mubr.msk.f32.mxu0 %vm289_vm1, %v5663_v31 }
  0x36   : > { %4473 = vmatmul.mubr.msk.f32.gmra.mrb[12].mxu1 %vm289_vm1, %v5674_v32 }
  0x37   : > { %4673 = vmatmul.mubr.msk.f32.gmra.mrb[12].mxu0 %vm289_vm1, %v5677_v33  ;;  %4475 = vmatprep.mubr.msk.f32.mxu1 %vm289_vm1, %v5680_v34 }
  0x38   : > { %4675 = vmatprep.mubr.msk.f32.mxu0 %vm289_vm1, %v5683_v35 }
  0x3a   : > { %4476 = vmatmul.mubr.msk.f32.gmra.mrb[14].mxu1 %vm289_vm1, %v5694_v36 }
  0x3b   : > { %4676 = vmatmul.mubr.msk.f32.gmra.mrb[14].mxu0 %vm289_vm1, %v5697_v37  ;;  %4478 = vmatprep.mubr.msk.f32.mxu1 %vm289_vm1, %v5700_v38 }
  0x3c   : > { %4678 = vmatprep.mubr.msk.f32.mxu0 %vm289_vm1, %v5703_v39 }
  0x3e   : > { %4479 = vmatmul.mubr.msk.f32.gmra.mrb[16].mxu1 %vm289_vm1, %v5714_v40 }
  0x3f   : > { %4679 = vmatmul.mubr.msk.f32.gmra.mrb[16].mxu0 %vm289_vm1, %v5717_v41  ;;  %4481 = vmatprep.mubr.msk.f32.mxu1 %vm289_vm1, %v5720_v42 }
  0x40   : > { %4681 = vmatprep.mubr.msk.f32.mxu0 %vm289_vm1, %v5723_v43 }
  0x42   : > { %4482 = vmatmul.mubr.msk.f32.gmra.mrb[18].mxu1 %vm289_vm1, %v5734_v44 }
  0x43   : > { %4682 = vmatmul.mubr.msk.f32.gmra.mrb[18].mxu0 %vm289_vm1, %v5737_v45  ;;  %4484 = vmatprep.mubr.msk.f32.mxu1 %vm289_vm1, %v5740_v46 }
  0x44   : > { %4684 = vmatprep.mubr.msk.f32.mxu0 %vm289_vm1, %v5743_v47 }
  0x46   : > { %4485 = vmatmul.mubr.msk.f32.gmra.mrb[20].mxu1 %vm289_vm1, %v5754_v48 }
  0x47   : > { %4685 = vmatmul.mubr.msk.f32.gmra.mrb[20].mxu0 %vm289_vm1, %v5757_v49  ;;  %4487 = vmatprep.mubr.msk.f32.mxu1 %vm289_vm1, %v5760_v50 }
  0x48   : > { %4704 = vmatprep.mubr.msk.f32.mxu0 %vm289_vm1, %v5547_v9 }
  0x4a   : > { %4488 = vmatmul.mubr.msk.f32.gmra.mrb[22].mxu1 %vm289_vm1, %v5771_v51 }
  0x4b   : > { %4705 = vmatmul.mubr.msk.f32.vlgmr.msra.gmra.mrb[0].mxu0 %vm289_vm1, %v5570_v13  ;;  %4490 = vmatprep.mubr.msk.f32.mxu1 %vm289_vm1, %v5774_v52 }
  0x4c   : > { %4753 = vmatpush3.msk.msra.mxu0 %vm386_vm0, %v5556_v10  ;;  %4707 = vmatprep.mubr.msk.f32.mxu0 %vm289_vm1, %v5578_v15  ;;  %v5927_v10 = vld [vmem:[%s5525_s26 + $0x159] sm:$0xff] }
  0x4d   : > { %4802 = vmatprep.subr.msk.mxu0 %vm386_vm0, %v5779_v53  ;;  %6819 = vst [vmem:[#allocation13_spill] sm:$0xff] %v5927_v10 }
  0x4e   : > { %4491 = vmatmul.mubr.msk.f32.gmra.mrb[24].mxu1 %vm289_vm1, %v5790_v54 }
  0x4f   : > { %4708 = vmatmul.mubr.msk.f32.gmra.mrb[2].mxu0 %vm289_vm1, %v5597_v17  ;;  %4493 = vmatprep.mubr.msk.f32.mxu1 %vm289_vm1, %v5795_v55 }
  0x50   : > { %4710 = vmatprep.mubr.msk.f32.mxu0 %vm289_vm1, %v5603_v19 }
  0x52   : > { %4494 = vmatmul.mubr.msk.f32.gmra.mrb[26].mxu1 %vm289_vm1, %v5808_v56 }
  0x53   : > { %4711 = vmatmul.mubr.msk.f32.gmra.mrb[4].mxu0 %vm289_vm1, %v5617_v21  ;;  %4496 = vmatprep.mubr.msk.f32.mxu1 %vm289_vm1, %v5811_v57 }
  0x54   : > { %4713 = vmatprep.mubr.msk.f32.mxu0 %vm289_vm1, %v5623_v23 }
  0x56   : > { %4497 = vmatmul.mubr.msk.f32.gmra.mrb[28].mxu1 %vm289_vm1, %v5822_v58 }
  0x57   : > { %4714 = vmatmul.mubr.msk.f32.gmra.mrb[6].mxu0 %vm289_vm1, %v5637_v25  ;;  %4499 = vmatprep.mubr.msk.f32.mxu1 %vm289_vm1, %v5825_v59 }
  0x58   : > { %4716 = vmatprep.mubr.msk.f32.mxu0 %vm289_vm1, %v5643_v27 }
  0x5a   : > { %4500 = vmatmul.mubr.msk.f32.gmra.mrb[30].mxu1 %vm289_vm1, %v5836_v60 }
  0x5b   : > { %4717 = vmatmul.mubr.msk.f32.gmra.mrb[8].mxu0 %vm289_vm1, %v5657_v29  ;;  %4504 = vmatprep.mubr.msk.f32.mxu1 %vm289_vm1, %v250_v61  ;;  %v5941_v61 = vld [vmem:[%s5525_s26 + $0x171] sm:$0xff] }
  0x5c   : > { %4719 = vmatprep.mubr.msk.f32.mxu0 %vm289_vm1, %v5663_v31  ;;  %6821 = vst [vmem:[#allocation15_spill] sm:$0xff] %v5941_v61 }
  0x5e   : > { %4505 = vmatmul.mubr.msk.f32.vlgmr.msra.gmra.mrb[0].mxu1 %vm289_vm1, %v251_v62  ;;  %v5944_v62 = vld [vmem:[%s5525_s26 + $0x181] sm:$0xff] }
  0x5f   : > { %4720 = vmatmul.mubr.msk.f32.gmra.mrb[10].mxu0 %vm289_vm1, %v5677_v33  ;;  %4507 = vmatprep.mubr.msk.f32.mxu1 %vm289_vm1, %v5528_v4  ;;  %v5913_v4 = vld [vmem:[%s5525_s26 + $0x141] sm:$0xff]  ;;  %6822 = vst [vmem:[#allocation16_spill] sm:$0xff] %v5944_v62 }
  0x60   : > { %4722 = vmatprep.mubr.msk.f32.mxu0 %vm289_vm1, %v5683_v35  ;;  %4553 = vmatpush3.msk.msra.mxu1 %vm386_vm0, %v5561_v11  ;;  %6817 = vst [vmem:[#allocation11_spill] sm:$0xff] %v5913_v4  ;;  %v5930_v11 = vld [vmem:[%s5525_s26 + $0x169] sm:$0xff] }
  0x61   : > { %4602 = vmatprep.subr.msk.mxu1 %vm386_vm0, %v5853_v63  ;;  %6820 = vst [vmem:[#allocation14_spill] sm:$0xff] %v5930_v11 }
  0x62   : > { %4508 = vmatmul.mubr.msk.f32.gmra.mrb[2].mxu1 %vm289_vm1, %v5534_v6  ;;  %v5916_v6 = vld [vmem:[%s5525_s26 + $0x151] sm:$0xff] }
  0x63   : > { %4723 = vmatmul.mubr.msk.f32.gmra.mrb[12].mxu0 %vm289_vm1, %v5697_v37  ;;  %4510 = vmatprep.mubr.msk.f32.mxu1 %vm289_vm1, %v5544_v8  ;;  %6818 = vst [vmem:[#allocation12_spill] sm:$0xff] %v5916_v6 }
  0x64   : > { %4725 = vmatprep.mubr.msk.f32.mxu0 %vm289_vm1, %v5703_v39 }
  0x66   : > { %4511 = vmatmul.mubr.msk.f32.gmra.mrb[4].mxu1 %vm289_vm1, %v5567_v12 }
  0x67   : > { %4726 = vmatmul.mubr.msk.f32.gmra.mrb[14].mxu0 %vm289_vm1, %v5717_v41  ;;  %4513 = vmatprep.mubr.msk.f32.mxu1 %vm289_vm1, %v5575_v14 }
  0x68   : > { %4728 = vmatprep.mubr.msk.f32.mxu0 %vm289_vm1, %v5723_v43 }
  0x6a   : > { %4514 = vmatmul.mubr.msk.f32.gmra.mrb[6].mxu1 %vm289_vm1, %v5594_v16 }
  0x6b   : > { %4729 = vmatmul.mubr.msk.f32.gmra.mrb[16].mxu0 %vm289_vm1, %v5737_v45  ;;  %4516 = vmatprep.mubr.msk.f32.mxu1 %vm289_vm1, %v5600_v18  ;;  %v6067_v45 = vld [vmem:[%s5525_s26 + $0xaa] sm:$0xff] }
  0x6c   : > { %4731 = vmatprep.mubr.msk.f32.mxu0 %vm289_vm1, %v5743_v47  ;;  %v6053_v47 = vld [vmem:[%s5525_s26 + $0x92] sm:$0xff] }
  0x6e   : > { %4517 = vmatmul.mubr.msk.f32.gmra.mrb[8].mxu1 %vm289_vm1, %v5614_v20 }
  0x6f   : > { %4732 = vmatmul.mubr.msk.f32.gmra.mrb[18].mxu0 %vm289_vm1, %v5757_v49  ;;  %4519 = vmatprep.mubr.msk.f32.mxu1 %vm289_vm1, %v5620_v22  ;;  %v6050_v49 = vld [vmem:[%s5525_s26 + $0x82] sm:$0xff] }
  0x70   : > { %4734 = vmatprep.mubr.msk.f32.mxu0 %vm289_vm1, %v5888_v0  ;;  %v6039_v0 = vld [vmem:[%s5525_s26 + $0x7a] sm:$0xff] }
  0x72   : > { %4520 = vmatmul.mubr.msk.f32.gmra.mrb[10].mxu1 %vm289_vm1, %v5634_v24 }
  0x73   : > { %4735 = vmatmul.mubr.msk.f32.gmra.mrb[20].mxu0 %vm289_vm1, %v5899_v2  ;;  %4522 = vmatprep.mubr.msk.f32.mxu1 %vm289_vm1, %v5640_v26  ;;  %v6036_v2 = vld [vmem:[%s5525_s26 + $0x6a] sm:$0xff] }
  0x74   : > { %4737 = vmatprep.mubr.msk.f32.mxu0 %vm289_vm1, %v5902_v3  ;;  %v6025_v3 = vld [vmem:[%s5525_s26 + $0x62] sm:$0xff] }
  0x76   : > { %4523 = vmatmul.mubr.msk.f32.gmra.mrb[12].mxu1 %vm289_vm1, %v5654_v28 }
  0x77   : > { %4738 = vmatmul.mubr.msk.f32.gmra.mrb[22].mxu0 %vm289_vm1, %v5913_v4  ;;  %4525 = vmatprep.mubr.msk.f32.mxu1 %vm289_vm1, %v5660_v30  ;;  %v6022_v4 = vld [vmem:[%s5525_s26 + $0x52] sm:$0xff] }
  0x78   : > { %4740 = vmatprep.mubr.msk.f32.mxu0 %vm289_vm1, %v5916_v6  ;;  %v2047_v6 = vld [vmem:[%s5525_s26 + $0x2] sm:$0xff] }
  0x7a   : > { %4526 = vmatmul.mubr.msk.f32.gmra.mrb[14].mxu1 %vm289_vm1, %v5674_v32 }
  0x7b   : > { %4741 = vmatmul.mubr.msk.f32.gmra.mrb[24].mxu0 %vm289_vm1, %v5927_v10  ;;  %4528 = vmatprep.mubr.msk.f32.mxu1 %vm289_vm1, %v5680_v34  ;;  %v5955_v10 = vld [vmem:[%s5525_s26 + $0x189] sm:$0xff] }
  0x7c   : > { %4743 = vmatprep.mubr.msk.f32.mxu0 %vm289_vm1, %v5930_v11  ;;  %6823 = vst [vmem:[#allocation17_spill] sm:$0xff] %v5955_v10  ;;  %v1151_v11 = vld [vmem:[%s5525_s26 + $0x199] sm:$0xff] }
  0x7e   : > { %4529 = vmatmul.mubr.msk.f32.gmra.mrb[16].mxu1 %vm289_vm1, %v5694_v36 }
  0x7f   : > { %4744 = vmatmul.mubr.msk.f32.gmra.mrb[26].mxu0 %vm289_vm1, %v5941_v61  ;;  %4531 = vmatprep.mubr.msk.f32.mxu1 %vm289_vm1, %v5700_v38  ;;  %v1152_v61 = vld [vmem:[%s5525_s26 + $0x1a1] sm:$0xff] }
  0x80   : > { %4746 = vmatprep.mubr.msk.f32.mxu0 %vm289_vm1, %v5944_v62  ;;  %v5975_v62 = vld [vmem:[%s5525_s26 + $0x1a] sm:$0xff] }
  0x82   : > { %4532 = vmatmul.mubr.msk.f32.gmra.mrb[18].mxu1 %vm289_vm1, %v5714_v40 }
  0x83   : > { %4747 = vmatmul.mubr.msk.f32.gmra.mrb[28].mxu0 %vm289_vm1, %v5955_v10  ;;  %4534 = vmatprep.mubr.msk.f32.mxu1 %vm289_vm1, %v5720_v42  ;;  %v2048_v10 = vld [vmem:[%s5525_s26 + $0xa] sm:$0xff] }
  0x84   : > { %4749 = vmatprep.mubr.msk.f32.mxu0 %vm289_vm1, %v1151_v11  ;;  %v5980_v11 = vld [vmem:[%s6782_s1 + $0x20] sm:$0xf] }
  0x86   : > { %4535 = vmatmul.mubr.msk.f32.gmra.mrb[20].mxu1 %vm289_vm1, %v5734_v44 }
  0x87   : > { %4750 = vmatmul.mubr.msk.f32.gmra.mrb[30].mxu0 %vm289_vm1, %v1152_v61  ;;  %4537 = vmatprep.mubr.msk.f32.mxu1 %vm289_vm1, %v5740_v46  ;;  %v5995_v61 = vld [vmem:[%s5525_s26 + $0x32] sm:$0xff] }
  0x88   : > { %4754 = vmatprep.mubr.msk.f32.mxu0 %vm289_vm1, %v2047_v6  ;;  %v5990_v6 = vld [vmem:[%s5525_s26 + $0x22] sm:$0xff] }
  0x8a   : > { %4538 = vmatmul.mubr.msk.f32.gmra.mrb[22].mxu1 %vm289_vm1, %v5754_v48 }
  0x8b   : > { %4755 = vmatmul.mubr.msk.f32.vlgmr.msra.gmra.mrb[0].mxu0 %vm289_vm1, %v2048_v10  ;;  %4540 = vmatprep.mubr.msk.f32.mxu1 %vm289_vm1, %v5760_v50  ;;  %v6011_v10 = vld [vmem:[%s5525_s26 + $0x4a] sm:$0xff] }
  0x8c   : > { %4803 = vmatpush3.msk.msra.mxu0 %vm386_vm0, %v5779_v53  ;;  %4757 = vmatprep.mubr.msk.f32.mxu0 %vm289_vm1, %v5975_v62  ;;  %v6008_v53 = vld [vmem:[%s5525_s26 + $0x3a] sm:$0xff] }
  0x8d   : > { %4852 = vmatprep.subr.msk.mxu0 %vm386_vm0, %v5980_v11 }
  0x8e   : > { %4541 = vmatmul.mubr.msk.f32.gmra.mrb[24].mxu1 %vm289_vm1, %v5771_v51 }
  0x8f   : > { %4758 = vmatmul.mubr.msk.f32.gmra.mrb[2].mxu0 %vm289_vm1, %v5990_v6  ;;  %4543 = vmatprep.mubr.msk.f32.mxu1 %vm289_vm1, %v5774_v52 }
  0x90   : > { %4760 = vmatprep.mubr.msk.f32.mxu0 %vm289_vm1, %v5995_v61 }
  0x92   : > { %4544 = vmatmul.mubr.msk.f32.gmra.mrb[26].mxu1 %vm289_vm1, %v5790_v54 }
  0x93   : > { %4761 = vmatmul.mubr.msk.f32.gmra.mrb[4].mxu0 %vm289_vm1, %v6008_v53  ;;  %4546 = vmatprep.mubr.msk.f32.mxu1 %vm289_vm1, %v5795_v55 }
  0x94   : > { %4763 = vmatprep.mubr.msk.f32.mxu0 %vm289_vm1, %v6011_v10 }
  0x96   : > { %4547 = vmatmul.mubr.msk.f32.gmra.mrb[28].mxu1 %vm289_vm1, %v5808_v56 }
  0x97   : > { %4764 = vmatmul.mubr.msk.f32.gmra.mrb[6].mxu0 %vm289_vm1, %v6022_v4  ;;  %4549 = vmatprep.mubr.msk.f32.mxu1 %vm289_vm1, %v5811_v57 }
  0x98   : > { %4766 = vmatprep.mubr.msk.f32.mxu0 %vm289_vm1, %v6025_v3 }
  0x9a   : > { %4550 = vmatmul.mubr.msk.f32.gmra.mrb[30].mxu1 %vm289_vm1, %v5822_v58 }
  0x9b   : > { %4767 = vmatmul.mubr.msk.f32.gmra.mrb[8].mxu0 %vm289_vm1, %v6036_v2  ;;  %4554 = vmatprep.mubr.msk.f32.mxu1 %vm289_vm1, %v5544_v8  ;;  %v6064_v8 = vld [vmem:[%s5525_s26 + $0x9a] sm:$0xff] }
  0x9c   : > { %4769 = vmatprep.mubr.msk.f32.mxu0 %vm289_vm1, %v6039_v0 }
  0x9e   : > { %4555 = vmatmul.mubr.msk.f32.vlgmr.msra.gmra.mrb[0].mxu1 %vm289_vm1, %v5567_v12  ;;  %v6082_v12 = vld [vmem:[%s5525_s26 + $0xb2] sm:$0xff] }
  0x9f   : > { %4770 = vmatmul.mubr.msk.f32.gmra.mrb[10].mxu0 %vm289_vm1, %v6050_v49  ;;  %4557 = vmatprep.mubr.msk.f32.mxu1 %vm289_vm1, %v5575_v14  ;;  %v6085_v14 = vld [vmem:[%s5525_s26 + $0xc2] sm:$0xff] }
  0xa0   : > { %4772 = vmatprep.mubr.msk.f32.mxu0 %vm289_vm1, %v6053_v47  ;;  %4603 = vmatpush3.msk.msra.mxu1 %vm386_vm0, %v5853_v63 }
  0xa1   : > { %4968 = vmatprep.subr.msk.mxu1 %vm386_vm0, %v5504_v1 }
  0xa2   : > { %4558 = vmatmul.mubr.msk.f32.gmra.mrb[2].mxu1 %vm289_vm1, %v5594_v16  ;;  %v6096_v16 = vld [vmem:[%s5525_s26 + $0xca] sm:$0xff] }
  0xa3   : > { %4773 = vmatmul.mubr.msk.f32.gmra.mrb[12].mxu0 %vm289_vm1, %v6064_v8  ;;  %4560 = vmatprep.mubr.msk.f32.mxu1 %vm289_vm1, %v5600_v18  ;;  %v6099_v18 = vld [vmem:[%s5525_s26 + $0xda] sm:$0xff] }
  0xa4   : > { %4775 = vmatprep.mubr.msk.f32.mxu0 %vm289_vm1, %v6067_v45 }
  0xa6   : > { %4561 = vmatmul.mubr.msk.f32.gmra.mrb[4].mxu1 %vm289_vm1, %v5614_v20  ;;  %v6110_v20 = vld [vmem:[%s5525_s26 + $0xe2] sm:$0xff] }
  0xa7   : > { %4776 = vmatmul.mubr.msk.f32.gmra.mrb[14].mxu0 %vm289_vm1, %v6082_v12  ;;  %4563 = vmatprep.mubr.msk.f32.mxu1 %vm289_vm1, %v5620_v22  ;;  %v6113_v22 = vld [vmem:[%s5525_s26 + $0xf2] sm:$0xff] }
  0xa8   : > { %4778 = vmatprep.mubr.msk.f32.mxu0 %vm289_vm1, %v6085_v14 }
  0xaa   : > { %4564 = vmatmul.mubr.msk.f32.gmra.mrb[6].mxu1 %vm289_vm1, %v5634_v24  ;;  %v6124_v24 = vld [vmem:[%s5525_s26 + $0xfa] sm:$0xff] }
  0xab   : > { %4779 = vmatmul.mubr.msk.f32.gmra.mrb[16].mxu0 %vm289_vm1, %v6096_v16  ;;  %4566 = vmatprep.mubr.msk.f32.mxu1 %vm289_vm1, %v5640_v26  ;;  %v6127_v26 = vld [vmem:[%s5525_s26 + $0x10a] sm:$0xff] }
  0xac   : > { %4781 = vmatprep.mubr.msk.f32.mxu0 %vm289_vm1, %v6099_v18 }
  0xae   : > { %4567 = vmatmul.mubr.msk.f32.gmra.mrb[8].mxu1 %vm289_vm1, %v5654_v28  ;;  %v6138_v28 = vld [vmem:[%s5525_s26 + $0x112] sm:$0xff] }
  0xaf   : > { %4782 = vmatmul.mubr.msk.f32.gmra.mrb[18].mxu0 %vm289_vm1, %v6110_v20  ;;  %4569 = vmatprep.mubr.msk.f32.mxu1 %vm289_vm1, %v5660_v30  ;;  %v6141_v30 = vld [vmem:[%s5525_s26 + $0x122] sm:$0xff] }
  0xb0   : > { %4784 = vmatprep.mubr.msk.f32.mxu0 %vm289_vm1, %v6113_v22 }
  0xb2   : > { %4570 = vmatmul.mubr.msk.f32.gmra.mrb[10].mxu1 %vm289_vm1, %v5674_v32  ;;  %v6152_v32 = vld [vmem:[%s5525_s26 + $0x12a] sm:$0xff] }
  0xb3   : > { %4785 = vmatmul.mubr.msk.f32.gmra.mrb[20].mxu0 %vm289_vm1, %v6124_v24  ;;  %4572 = vmatprep.mubr.msk.f32.mxu1 %vm289_vm1, %v5680_v34  ;;  %v6155_v34 = vld [vmem:[%s5525_s26 + $0x13a] sm:$0xff] }
  0xb4   : > { %4787 = vmatprep.mubr.msk.f32.mxu0 %vm289_vm1, %v6127_v26 }
  0xb6   : > { %4573 = vmatmul.mubr.msk.f32.gmra.mrb[12].mxu1 %vm289_vm1, %v5694_v36  ;;  %v6166_v36 = vld [vmem:[%s5525_s26 + $0x142] sm:$0xff] }
  0xb7   : > { %4788 = vmatmul.mubr.msk.f32.gmra.mrb[22].mxu0 %vm289_vm1, %v6138_v28  ;;  %4575 = vmatprep.mubr.msk.f32.mxu1 %vm289_vm1, %v5700_v38  ;;  %v6169_v38 = vld [vmem:[%s5525_s26 + $0x152] sm:$0xff] }
  0xb8   : > { %4790 = vmatprep.mubr.msk.f32.mxu0 %vm289_vm1, %v6141_v30 }
  0xba   : > { %4576 = vmatmul.mubr.msk.f32.gmra.mrb[14].mxu1 %vm289_vm1, %v5714_v40  ;;  %v6180_v40 = vld [vmem:[%s5525_s26 + $0x15a] sm:$0xff] }
  0xbb   : > { %4791 = vmatmul.mubr.msk.f32.gmra.mrb[24].mxu0 %vm289_vm1, %v6152_v32  ;;  %4578 = vmatprep.mubr.msk.f32.mxu1 %vm289_vm1, %v5720_v42  ;;  %v6183_v42 = vld [vmem:[%s5525_s26 + $0x16a] sm:$0xff] }
  0xbc   : > { %4793 = vmatprep.mubr.msk.f32.mxu0 %vm289_vm1, %v6155_v34 }
  0xbe   : > { %4579 = vmatmul.mubr.msk.f32.gmra.mrb[16].mxu1 %vm289_vm1, %v5734_v44  ;;  %v6194_v44 = vld [vmem:[%s5525_s26 + $0x172] sm:$0xff] }
  0xbf   : > { %4794 = vmatmul.mubr.msk.f32.gmra.mrb[26].mxu0 %vm289_vm1, %v6166_v36  ;;  %4581 = vmatprep.mubr.msk.f32.mxu1 %vm289_vm1, %v5740_v46  ;;  %v284_v46 = vld [vmem:[%s5525_s26 + $0x198] sm:$0xff] }
  0xc0   : > { %4796 = vmatprep.mubr.msk.f32.mxu0 %vm289_vm1, %v6169_v38 }
  0xc2   : > { %4582 = vmatmul.mubr.msk.f32.gmra.mrb[18].mxu1 %vm289_vm1, %v5754_v48  ;;  %v285_v48 = vld [vmem:[%s5525_s26 + $0x1a0] sm:$0xff] }
  0xc3   : > { %4797 = vmatmul.mubr.msk.f32.gmra.mrb[28].mxu0 %vm289_vm1, %v6180_v40  ;;  %4584 = vmatprep.mubr.msk.f32.mxu1 %vm289_vm1, %v5760_v50  ;;  %v1117_v50 = vld [vmem:[%s5525_s26 + $0x1] sm:$0xff] }
  0xc4   : > { %4799 = vmatprep.mubr.msk.f32.mxu0 %vm289_vm1, %v6183_v42 }
  0xc6   : > { %4585 = vmatmul.mubr.msk.f32.gmra.mrb[20].mxu1 %vm289_vm1, %v5771_v51  ;;  %v1118_v51 = vld [vmem:[%s5525_s26 + $0x9] sm:$0xff] }
  0xc7   : > { %4800 = vmatmul.mubr.msk.f32.gmra.mrb[30].mxu0 %vm289_vm1, %v6194_v44  ;;  %4587 = vmatprep.mubr.msk.f32.mxu1 %vm289_vm1, %v5774_v52 }
  0xc8   : > { %4804 = vmatprep.mubr.msk.f32.mxu0 %vm289_vm1, %v5975_v62 }
  0xca   : > { %4588 = vmatmul.mubr.msk.f32.gmra.mrb[22].mxu1 %vm289_vm1, %v5790_v54 }
  0xcb   : > { %4805 = vmatmul.mubr.msk.f32.vlgmr.msra.gmra.mrb[0].mxu0 %vm289_vm1, %v5990_v6  ;;  %4590 = vmatprep.mubr.msk.f32.mxu1 %vm289_vm1, %v5795_v55 }
  0xcc   : > { %4853 = vmatpush3.msk.msra.mxu0 %vm386_vm0, %v5980_v11  ;;  %4807 = vmatprep.mubr.msk.f32.mxu0 %vm289_vm1, %v5995_v61 }
  0xce   : > { %4591 = vmatmul.mubr.msk.f32.gmra.mrb[24].mxu1 %vm289_vm1, %v5808_v56 }
  0xcf   : > { %4808 = vmatmul.mubr.msk.f32.gmra.mrb[2].mxu0 %vm289_vm1, %v6008_v53  ;;  %4593 = vmatprep.mubr.msk.f32.mxu1 %vm289_vm1, %v5811_v57 }
  0xd0   : > { %4810 = vmatprep.mubr.msk.f32.mxu0 %vm289_vm1, %v6011_v10 }
  0xd2   : > { %4594 = vmatmul.mubr.msk.f32.gmra.mrb[26].mxu1 %vm289_vm1, %v5822_v58 }
  0xd3   : > { %4811 = vmatmul.mubr.msk.f32.gmra.mrb[4].mxu0 %vm289_vm1, %v6022_v4  ;;  %4596 = vmatprep.mubr.msk.f32.mxu1 %vm289_vm1, %v5825_v59 }
  0xd4   : > { %4813 = vmatprep.mubr.msk.f32.mxu0 %vm289_vm1, %v6025_v3 }
  0xd6   : > { %4597 = vmatmul.mubr.msk.f32.gmra.mrb[28].mxu1 %vm289_vm1, %v5836_v60 }
  0xd7   : > { %4814 = vmatmul.mubr.msk.f32.gmra.mrb[6].mxu0 %vm289_vm1, %v6036_v2  ;;  %4599 = vmatprep.mubr.msk.f32.mxu1 %vm289_vm1, %v284_v46 }
  0xd8   : > { %4816 = vmatprep.mubr.msk.f32.mxu0 %vm289_vm1, %v6039_v0 }
  0xda   : > { %4600 = vmatmul.mubr.msk.f32.gmra.mrb[30].mxu1 %vm289_vm1, %v285_v48 }
  0xdb   : > { %4817 = vmatmul.mubr.msk.f32.gmra.mrb[8].mxu0 %vm289_vm1, %v6050_v49  ;;  %4604 = vmatprep.mubr.msk.f32.mxu1 %vm289_vm1, %v1117_v50 }
  0xdc   : > { %4819 = vmatprep.mubr.msk.f32.mxu0 %vm289_vm1, %v6053_v47 }
  0xde   : > { %4605 = vmatmul.mubr.msk.f32.vlgmr.msra.gmra.mrb[0].mxu1 %vm289_vm1, %v1118_v51 }
  0xdf   : > { %4820 = vmatmul.mubr.msk.f32.gmra.mrb[10].mxu0 %vm289_vm1, %v6064_v8  ;;  %4607 = vmatprep.mubr.msk.f32.mxu1 %vm289_vm1, %v5531_v5  ;;  %v2080_v5 = vld [vmem:[%s5525_s26 + $0x18a] sm:$0xff] }
  0xe0   : > { %4822 = vmatprep.mubr.msk.f32.mxu0 %vm289_vm1, %v6067_v45  ;;  %4969 = vmatpush3.msk.msra.mxu1 %vm386_vm0, %v5504_v1  ;;  %v2079_v1 = vld [vmem:[%s5525_s26 + $0x182] sm:$0xff] }
  0xe2   : > { %4608 = vmatmul.mubr.msk.f32.gmra.mrb[2].mxu1 %vm289_vm1, %v5541_v7  ;;  %v6824_v7 = vld [vmem:[#allocation5_spill] sm:$0xff] }
  0xe3   : > { %4823 = vmatmul.mubr.msk.f32.gmra.mrb[12].mxu0 %vm289_vm1, %v6082_v12  ;;  %4610 = vmatprep.mubr.msk.f32.mxu1 %vm289_vm1, %v5547_v9  ;;  %v6825_v9 = vld [vmem:[#allocation6_spill] sm:$0xff] }
  0xe4   : > { %4825 = vmatprep.mubr.msk.f32.mxu0 %vm289_vm1, %v6085_v14 }
  0xe6   : > { %4611 = vmatmul.mubr.msk.f32.gmra.mrb[4].mxu1 %vm289_vm1, %v5570_v13  ;;  %v6826_v13 = vld [vmem:[#allocation7_spill] sm:$0xff] }
  0xe7   : > { %4826 = vmatmul.mubr.msk.f32.gmra.mrb[14].mxu0 %vm289_vm1, %v6096_v16  ;;  %4613 = vmatprep.mubr.msk.f32.mxu1 %vm289_vm1, %v5578_v15  ;;  %v6827_v15 = vld [vmem:[#allocation8_spill] sm:$0xff] }
  0xe8   : > { %4828 = vmatprep.mubr.msk.f32.mxu0 %vm289_vm1, %v6099_v18 }
  0xea   : > { %4614 = vmatmul.mubr.msk.f32.gmra.mrb[6].mxu1 %vm289_vm1, %v5597_v17  ;;  %v6828_v17 = vld [vmem:[#allocation9_spill] sm:$0xff] }
  0xeb   : > { %4829 = vmatmul.mubr.msk.f32.gmra.mrb[16].mxu0 %vm289_vm1, %v6110_v20  ;;  %4616 = vmatprep.mubr.msk.f32.mxu1 %vm289_vm1, %v5603_v19  ;;  %v6829_v19 = vld [vmem:[#allocation10_spill] sm:$0xff] }
  0xec   : > { %4831 = vmatprep.mubr.msk.f32.mxu0 %vm289_vm1, %v6113_v22 }
  0xee   : > { %4617 = vmatmul.mubr.msk.f32.gmra.mrb[8].mxu1 %vm289_vm1, %v5617_v21  ;;  %v6830_v21 = vld [vmem:[#allocation11_spill] sm:$0xff] }
  0xef   : > { %4832 = vmatmul.mubr.msk.f32.gmra.mrb[18].mxu0 %vm289_vm1, %v6124_v24  ;;  %4619 = vmatprep.mubr.msk.f32.mxu1 %vm289_vm1, %v5623_v23  ;;  %v6831_v23 = vld [vmem:[#allocation12_spill] sm:$0xff] }
  0xf0   : > { %4834 = vmatprep.mubr.msk.f32.mxu0 %vm289_vm1, %v6127_v26 }
  0xf2   : > { %4620 = vmatmul.mubr.msk.f32.gmra.mrb[10].mxu1 %vm289_vm1, %v5637_v25  ;;  %v6832_v25 = vld [vmem:[#allocation13_spill] sm:$0xff] }
  0xf3   : > { %4835 = vmatmul.mubr.msk.f32.gmra.mrb[20].mxu0 %vm289_vm1, %v6138_v28  ;;  %4622 = vmatprep.mubr.msk.f32.mxu1 %vm289_vm1, %v5643_v27  ;;  %v6833_v27 = vld [vmem:[#allocation14_spill] sm:$0xff] }
  0xf4   : > { %4837 = vmatprep.mubr.msk.f32.mxu0 %vm289_vm1, %v6141_v30 }
  0xf6   : > { %4623 = vmatmul.mubr.msk.f32.gmra.mrb[12].mxu1 %vm289_vm1, %v5657_v29  ;;  %v6834_v29 = vld [vmem:[#allocation15_spill] sm:$0xff] }
  0xf7   : > { %4838 = vmatmul.mubr.msk.f32.gmra.mrb[22].mxu0 %vm289_vm1, %v6152_v32  ;;  %4625 = vmatprep.mubr.msk.f32.mxu1 %vm289_vm1, %v5663_v31  ;;  %v6835_v31 = vld [vmem:[#allocation16_spill] sm:$0xff] }
  0xf8   : > { %4840 = vmatprep.mubr.msk.f32.mxu0 %vm289_vm1, %v6155_v34 }
  0xfa   : > { %4626 = vmatmul.mubr.msk.f32.gmra.mrb[14].mxu1 %vm289_vm1, %v5677_v33  ;;  %v6836_v33 = vld [vmem:[#allocation17_spill] sm:$0xff] }
  0xfb   : > { %4841 = vmatmul.mubr.msk.f32.gmra.mrb[24].mxu0 %vm289_vm1, %v6166_v36  ;;  %4628 = vmatprep.mubr.msk.f32.mxu1 %vm289_vm1, %v5683_v35  ;;  %v2081_v35 = vld [vmem:[%s5525_s26 + $0x19a] sm:$0xff] }
  0xfc   : > { %4843 = vmatprep.mubr.msk.f32.mxu0 %vm289_vm1, %v6169_v38 }
  0xfe   : > { %4629 = vmatmul.mubr.msk.f32.gmra.mrb[16].mxu1 %vm289_vm1, %v5697_v37  ;;  %v2082_v37 = vld [vmem:[%s5525_s26 + $0x1a2] sm:$0xff] }
  0xff   : > { %4844 = vmatmul.mubr.msk.f32.gmra.mrb[26].mxu0 %vm289_vm1, %v6180_v40  ;;  %4631 = vmatprep.mubr.msk.f32.mxu1 %vm289_vm1, %v5703_v39 }
 0x100   : > { %4846 = vmatprep.mubr.msk.f32.mxu0 %vm289_vm1, %v6183_v42 }
 0x102   : > { %4632 = vmatmul.mubr.msk.f32.gmra.mrb[18].mxu1 %vm289_vm1, %v5717_v41 }
 0x103   : > { %4847 = vmatmul.mubr.msk.f32.gmra.mrb[28].mxu0 %vm289_vm1, %v6194_v44  ;;  %4634 = vmatprep.mubr.msk.f32.mxu1 %vm289_vm1, %v5723_v43 }
 0x104   : > { %4849 = vmatprep.mubr.msk.f32.mxu0 %vm289_vm1, %v2079_v1 }
 0x106   : > { %4635 = vmatmul.mubr.msk.f32.gmra.mrb[20].mxu1 %vm289_vm1, %v6824_v7 }
 0x107   : > { %4850 = vmatmul.mubr.msk.f32.gmra.mrb[30].mxu0 %vm289_vm1, %v2080_v5  ;;  %4637 = vmatprep.mubr.msk.f32.mxu1 %vm289_vm1, %v6825_v9 }
 0x108   : > { %4854 = vmatprep.mubr.msk.f32.mxu0 %vm289_vm1, %v5995_v61 }
 0x10a   : > { %4638 = vmatmul.mubr.msk.f32.gmra.mrb[22].mxu1 %vm289_vm1, %v6826_v13 }
 0x10b   : > { %4855 = vmatmul.mubr.msk.f32.vlgmr.msra.gmra.mrb[0].mxu0 %vm289_vm1, %v6008_v53  ;;  %4640 = vmatprep.mubr.msk.f32.mxu1 %vm289_vm1, %v6827_v15 }
 0x10c   : > { %4857 = vmatprep.mubr.msk.f32.mxu0 %vm289_vm1, %v6011_v10 }
 0x10e   : > { %4641 = vmatmul.mubr.msk.f32.gmra.mrb[24].mxu1 %vm289_vm1, %v6828_v17 }
 0x10f   : > { %4858 = vmatmul.mubr.msk.f32.gmra.mrb[2].mxu0 %vm289_vm1, %v6022_v4  ;;  %4643 = vmatprep.mubr.msk.f32.mxu1 %vm289_vm1, %v6829_v19 }
 0x110   : > { %4860 = vmatprep.mubr.msk.f32.mxu0 %vm289_vm1, %v6025_v3 }
 0x112   : > { %4644 = vmatmul.mubr.msk.f32.gmra.mrb[26].mxu1 %vm289_vm1, %v6830_v21 }
 0x113   : > { %4861 = vmatmul.mubr.msk.f32.gmra.mrb[4].mxu0 %vm289_vm1, %v6036_v2  ;;  %4646 = vmatprep.mubr.msk.f32.mxu1 %vm289_vm1, %v6831_v23 }
 0x114   : > { %4863 = vmatprep.mubr.msk.f32.mxu0 %vm289_vm1, %v6039_v0 }
 0x116   : > { %4647 = vmatmul.mubr.msk.f32.gmra.mrb[28].mxu1 %vm289_vm1, %v6832_v25 }
 0x117   : > { %4864 = vmatmul.mubr.msk.f32.gmra.mrb[6].mxu0 %vm289_vm1, %v6050_v49  ;;  %4649 = vmatprep.mubr.msk.f32.mxu1 %vm289_vm1, %v6833_v27 }
 0x118   : > { %4866 = vmatprep.mubr.msk.f32.mxu0 %vm289_vm1, %v6053_v47 }
 0x11a   : > { %4650 = vmatmul.mubr.msk.f32.gmra.mrb[30].mxu1 %vm289_vm1, %v6834_v29 }
 0x11b   : > { %4867 = vmatmul.mubr.msk.f32.gmra.mrb[8].mxu0 %vm289_vm1, %v6064_v8  ;;  %4687 = vmatprep.mubr.msk.f32.mxu1 %vm289_vm1, %v6827_v15 }
 0x11c   : > { %4869 = vmatprep.mubr.msk.f32.mxu0 %vm289_vm1, %v6067_v45 }
 0x11e   : > { %4688 = vmatmul.mubr.msk.f32.vlgmr.msra.gmra.mrb[22].mxu1 %vm289_vm1, %v6828_v17 }
 0x11f   : > { %4870 = vmatmul.mubr.msk.f32.gmra.mrb[10].mxu0 %vm289_vm1, %v6082_v12  ;;  %4690 = vmatprep.mubr.msk.f32.mxu1 %vm289_vm1, %v6829_v19 }
 0x120   : > { %4872 = vmatprep.mubr.msk.f32.mxu0 %vm289_vm1, %v6085_v14 }
 0x122   : > { %4691 = vmatmul.mubr.msk.f32.gmra.mrb[24].mxu1 %vm289_vm1, %v6830_v21 }
 0x123   : > { %4873 = vmatmul.mubr.msk.f32.gmra.mrb[12].mxu0 %vm289_vm1, %v6096_v16  ;;  %4693 = vmatprep.mubr.msk.f32.mxu1 %vm289_vm1, %v6831_v23 }
 0x124   : > { %4875 = vmatprep.mubr.msk.f32.mxu0 %vm289_vm1, %v6099_v18 }
 0x126   : > { %4694 = vmatmul.mubr.msk.f32.gmra.mrb[26].mxu1 %vm289_vm1, %v6832_v25 }
 0x127   : > { %4876 = vmatmul.mubr.msk.f32.gmra.mrb[14].mxu0 %vm289_vm1, %v6110_v20  ;;  %4696 = vmatprep.mubr.msk.f32.mxu1 %vm289_vm1, %v6833_v27 }
 0x128   : > { %4878 = vmatprep.mubr.msk.f32.mxu0 %vm289_vm1, %v6113_v22 }
 0x12a   : > { %4697 = vmatmul.mubr.msk.f32.gmra.mrb[28].mxu1 %vm289_vm1, %v6834_v29 }
 0x12b   : > { %4879 = vmatmul.mubr.msk.f32.gmra.mrb[16].mxu0 %vm289_vm1, %v6124_v24  ;;  %4699 = vmatprep.mubr.msk.f32.mxu1 %vm289_vm1, %v6835_v31 }
 0x12c   : > { %4881 = vmatprep.mubr.msk.f32.mxu0 %vm289_vm1, %v6127_v26 }
 0x12e   : > { %4700 = vmatmul.mubr.msk.f32.gmra.mrb[30].mxu1 %vm289_vm1, %v6836_v33 }
 0x12f   : > { %4882 = vmatmul.mubr.msk.f32.gmra.mrb[18].mxu0 %vm289_vm1, %v6138_v28 }
 0x130   : > { %4884 = vmatprep.mubr.msk.f32.mxu0 %vm289_vm1, %v6141_v30 }
 0x133   : > { %4885 = vmatmul.mubr.msk.f32.gmra.mrb[20].mxu0 %vm289_vm1, %v6152_v32 }
 0x134   : > { %4887 = vmatprep.mubr.msk.f32.mxu0 %vm289_vm1, %v6155_v34 }
 0x137   : > { %4888 = vmatmul.mubr.msk.f32.gmra.mrb[22].mxu0 %vm289_vm1, %v6166_v36 }
 0x138   : > { %4890 = vmatprep.mubr.msk.f32.mxu0 %vm289_vm1, %v6169_v38 }
 0x13b   : > { %4891 = vmatmul.mubr.msk.f32.gmra.mrb[24].mxu0 %vm289_vm1, %v6180_v40 }
 0x13c   : > { %4893 = vmatprep.mubr.msk.f32.mxu0 %vm289_vm1, %v6183_v42 }
 0x13f   : > { %4894 = vmatmul.mubr.msk.f32.gmra.mrb[26].mxu0 %vm289_vm1, %v6194_v44 }
 0x140   : > { %4896 = vmatprep.mubr.msk.f32.mxu0 %vm289_vm1, %v2079_v1 }
 0x143   : > { %4897 = vmatmul.mubr.msk.f32.gmra.mrb[28].mxu0 %vm289_vm1, %v2080_v5 }
 0x144   : > { %4899 = vmatprep.mubr.msk.f32.mxu0 %vm289_vm1, %v2081_v35 }
 0x147   : > { %4900 = vmatmul.mubr.msk.f32.gmra.mrb[30].mxu0 %vm289_vm1, %v2082_v37 }
 0x1b1   : > { %v4606_v39 = vpop.f32.mrb[0].mxu1 }
 0x1b2   : > { %v1320_v41 = vpop.f32.mrb[1].mxu1 }
 0x1b5   : > { %v4609_v43 = vpop.f32.mrb[2].mxu1 }
 0x1b6   : > { %v1330_v45 = vpop.f32.mrb[3].mxu1 }
 0x1b9   : > { %v4612_v47 = vpop.f32.mrb[4].mxu1 }
 0x1ba   : > { %v1340_v49 = vpop.f32.mrb[5].mxu1 }
 0x1bd   : > { %v4615_v52 = vpop.f32.mrb[6].mxu1 }
 0x1be   : > { %v1350_v54 = vpop.f32.mrb[7].mxu1 }
 0x1c1   : > { %v4618_v55 = vpop.f32.mrb[8].mxu1 }
 0x1c2   : > { %v1360_v56 = vpop.f32.mrb[9].mxu1 }
 0x1c5   : > { %v4621_v57 = vpop.f32.mrb[10].mxu1 }
 0x1c6   : > { %v1370_v58 = vpop.f32.mrb[11].mxu1 }
 0x1c9   : > { %v4624_v59 = vpop.f32.mrb[12].mxu1 }
 0x1ca   : > { %v1380_v60 = vpop.f32.mrb[13].mxu1 }
 0x1cd   : > { %v4627_v63 = vpop.f32.mrb[14].mxu1 }
 0x1ce   : > { %v1390_v0 = vpop.f32.mrb[15].mxu1 }
 0x1d1   : > { %v4630_v2 = vpop.f32.mrb[16].mxu1 }
 0x1d2   : > { %v1400_v3 = vpop.f32.mrb[17].mxu1 }
 0x1d5   : > { %v4633_v4 = vpop.f32.mrb[18].mxu1 }
 0x1d6   : > { %v1410_v62 = vpop.f32.mrb[19].mxu1 }
 0x1d9   : > { %v6434_v11 = vpop.f32.mrb[20].mxu1 }
 0x1da   : > { %v6436_v6 = vpop.f32.mrb[21].mxu1 }
 0x1de   : > { %v4856_v61 = vpop.f32.mrb[0].mxu0 }
 0x1df   : > { %v4970_v53 = vadd.f32 %v4856_v61, %v4606_v39  ;;  %v2786_v10 = vpop.f32.mrb[1].mxu0 }
 0x1e0   : > { %v4971_v8 = vadd.f32 %v2786_v10, %v1320_v41 }
 0x1e2   : > { %v4859_v12 = vpop.f32.mrb[2].mxu0  ;;  %2977 = vxpose.xlu0.b32.start [1/16] (narrow) %v4971_v8, 64 }
 0x1e3   : > { %v4972_v14 = vadd.f32 %v4859_v12, %v4609_v43  ;;  %v2796_v16 = vpop.f32.mrb[3].mxu0 }
 0x1e4   : > { %v4973_v18 = vadd.f32 %v2796_v16, %v1330_v45 }
 0x1e6   : > { %v4862_v20 = vpop.f32.mrb[4].mxu0  ;;  %2978 = vxpose.xlu0.b32.cont [2/16] (narrow) %v4970_v53, 64 }
 0x1e7   : > { %v4974_v22 = vadd.f32 %v4862_v20, %v4612_v47  ;;  %v2806_v24 = vpop.f32.mrb[5].mxu0 }
 0x1e8   : > { %v4975_v26 = vadd.f32 %v2806_v24, %v1340_v49 }
 0x1ea   : > { %v4865_v28 = vpop.f32.mrb[6].mxu0  ;;  %2979 = vxpose.xlu0.b32.cont [3/16] (narrow) %v4973_v18, 64 }
 0x1eb   : > { %v4976_v30 = vadd.f32 %v4865_v28, %v4615_v52  ;;  %v2816_v32 = vpop.f32.mrb[7].mxu0 }
 0x1ec   : > { %v4977_v34 = vadd.f32 %v2816_v32, %v1350_v54 }
 0x1ee   : > { %v4868_v36 = vpop.f32.mrb[8].mxu0  ;;  %2980 = vxpose.xlu0.b32.cont [4/16] (narrow) %v4972_v14, 64 }
 0x1ef   : > { %v4978_v38 = vadd.f32 %v4868_v36, %v4618_v55  ;;  %v2826_v40 = vpop.f32.mrb[9].mxu0 }
 0x1f0   : > { %v4979_v42 = vadd.f32 %v2826_v40, %v1360_v56 }
 0x1f1   : > { %v4689_v46 = vpop.f32.mrb[22].mxu1 }
 0x1f2   : > { %v4871_v44 = vpop.f32.mrb[10].mxu0  ;;  %2981 = vxpose.xlu0.b32.cont [5/16] (narrow) %v4975_v26, 64  ;;  %v1698_v50 = vpop.f32.mrb[23].mxu1 }
 0x1f3   : > { %v4980_v48 = vadd.f32 %v4871_v44, %v4621_v57  ;;  %v2836_v51 = vpop.f32.mrb[11].mxu0 }
 0x1f4   : > { %v4981_v1 = vadd.f32 %v2836_v51, %v1370_v58 }
 0x1f5   : > { %v4692_v7 = vpop.f32.mrb[24].mxu1 }
 0x1f6   : > { %v4874_v5 = vpop.f32.mrb[12].mxu0  ;;  %2982 = vxpose.xlu0.b32.cont [6/16] (narrow) %v4974_v22, 64  ;;  %v1708_v13 = vpop.f32.mrb[25].mxu1 }
 0x1f7   : > { %v4982_v9 = vadd.f32 %v4874_v5, %v4624_v59  ;;  %v2846_v15 = vpop.f32.mrb[13].mxu0 }
 0x1f8   : > { %v4983_v17 = vadd.f32 %v2846_v15, %v1380_v60 }
 0x1f9   : > { %v4695_v21 = vpop.f32.mrb[26].mxu1 }
 0x1fa   : > { %v4877_v19 = vpop.f32.mrb[14].mxu0  ;;  %2983 = vxpose.xlu0.b32.cont [7/16] (narrow) %v4977_v34, 64  ;;  %v1718_v25 = vpop.f32.mrb[27].mxu1 }
 0x1fb   : > { %v4984_v23 = vadd.f32 %v4877_v19, %v4627_v63  ;;  %v2856_v27 = vpop.f32.mrb[15].mxu0 }
 0x1fc   : > { %v4985_v29 = vadd.f32 %v2856_v27, %v1390_v0 }
 0x1fd   : > { %v4698_v33 = vpop.f32.mrb[28].mxu1 }
 0x1fe   : > { %v4880_v31 = vpop.f32.mrb[16].mxu0  ;;  %2984 = vxpose.xlu0.b32.cont [8/16] (narrow) %v4976_v30, 64  ;;  %v1728_v37 = vpop.f32.mrb[29].mxu1 }
 0x1ff   : > { %v4986_v35 = vadd.f32 %v4880_v31, %v4630_v2  ;;  %v2866_v39 = vpop.f32.mrb[17].mxu0 }
 0x200   : > { %v4987_v41 = vadd.f32 %v2866_v39, %v1400_v3 }
 0x201   : > { %v4701_v45 = vpop.f32.mrb[30].mxu1 }
 0x202   : > { %v4883_v43 = vpop.f32.mrb[18].mxu0  ;;  %2985 = vxpose.xlu0.b32.cont [9/16] (narrow) %v4979_v42, 64  ;;  %3009 = vxpose.xlu1.b32.start [1/16] (narrow) %v4987_v41, 64  ;;  %v1738_v49 = vpop.f32.mrb[31].mxu1 }
 0x203   : > { %v4988_v47 = vadd.f32 %v4883_v43, %v4633_v4  ;;  %v2876_v52 = vpop.f32.mrb[19].mxu0 }
 0x204   : > { %v4989_v54 = vadd.f32 %v2876_v52, %v1410_v62 }
 0x206   : > { %v4886_v55 = vpop.f32.mrb[20].mxu0  ;;  %2986 = vxpose.xlu0.b32.cont [10/16] (narrow) %v4978_v38, 64  ;;  %3010 = vxpose.xlu1.b32.cont [2/16] (narrow) %v4986_v35, 64 }
 0x207   : > { %v4990_v56 = vadd.f32 %v4886_v55, %v6434_v11  ;;  %v2886_v57 = vpop.f32.mrb[21].mxu0 }
 0x208   : > { %v4991_v58 = vadd.f32 %v2886_v57, %v6436_v6 }
 0x20a   : > { %v4889_v59 = vpop.f32.mrb[22].mxu0  ;;  %2987 = vxpose.xlu0.b32.cont [11/16] (narrow) %v4981_v1, 64  ;;  %3011 = vxpose.xlu1.b32.cont [3/16] (narrow) %v4989_v54, 64 }
 0x20b   : > { %v4992_v60 = vadd.f32 %v4889_v59, %v4689_v46  ;;  %v2896_v63 = vpop.f32.mrb[23].mxu0 }
 0x20c   : > { %v4993_v0 = vadd.f32 %v2896_v63, %v1698_v50 }
 0x20e   : > { %v4892_v2 = vpop.f32.mrb[24].mxu0  ;;  %2988 = vxpose.xlu0.b32.cont [12/16] (narrow) %v4980_v48, 64  ;;  %3012 = vxpose.xlu1.b32.cont [4/16] (narrow) %v4988_v47, 64 }
 0x20f   : > { %v4994_v3 = vadd.f32 %v4892_v2, %v4692_v7  ;;  %v2906_v4 = vpop.f32.mrb[25].mxu0  ;;  %v3114_v2 = vld [vmem:[%s6783_s2] sm:$0xff] }
 0x210   : > { %v4995_v62 = vadd.f32 %v2906_v4, %v1708_v13  ;;  %4918 = vmatprep.mubr.msk.f32.mxu1 %vm3118_vm2, %v3114_v2 }
 0x212   : > { %v4895_v61 = vpop.f32.mrb[26].mxu0  ;;  %2989 = vxpose.xlu0.b32.cont [13/16] (narrow) %v4983_v17, 64  ;;  %3013 = vxpose.xlu1.b32.cont [5/16] (narrow) %v4991_v58, 64 }
 0x213   : > { %v4996_v53 = vadd.f32 %v4895_v61, %v4695_v21  ;;  %v2916_v11 = vpop.f32.mrb[27].mxu0 }
 0x214   : > { %v4997_v10 = vadd.f32 %v2916_v11, %v1718_v25 }
 0x216   : > { %v4898_v8 = vpop.f32.mrb[28].mxu0  ;;  %2990 = vxpose.xlu0.b32.cont [14/16] (narrow) %v4982_v9, 64  ;;  %3014 = vxpose.xlu1.b32.cont [6/16] (narrow) %v4990_v56, 64 }
 0x217   : > { %v4998_v6 = vadd.f32 %v4898_v8, %v4698_v33  ;;  %v2926_v12 = vpop.f32.mrb[29].mxu0 }
 0x218   : > { %v4999_v14 = vadd.f32 %v2926_v12, %v1728_v37 }
 0x21a   : > { %v4901_v16 = vpop.f32.mrb[30].mxu0  ;;  %2991 = vxpose.xlu0.b32.cont [15/16] (narrow) %v4985_v29, 64  ;;  %3015 = vxpose.xlu1.b32.cont [7/16] (narrow) %v4993_v0, 64 }
 0x21b   : > { %v5000_v18 = vadd.f32 %v4901_v16, %v4701_v45  ;;  %v2936_v20 = vpop.f32.mrb[31].mxu0 }
 0x21c   : > { %v5001_v22 = vadd.f32 %v2936_v20, %v1738_v49 }
 0x21e   : > { %2992 = vxpose.xlu0.b32.end [16/16] (narrow) %v4984_v23, 64  ;;  %3016 = vxpose.xlu1.b32.cont [8/16] (narrow) %v4992_v60, 64 }
 0x222   : > { %3017 = vxpose.xlu1.b32.cont [9/16] (narrow) %v4995_v62, 64 }
 0x226   : > { %3018 = vxpose.xlu1.b32.cont [10/16] (narrow) %v4994_v3, 64 }
 0x22a   : > { %3019 = vxpose.xlu1.b32.cont [11/16] (narrow) %v4997_v10, 64 }
 0x22e   : > { %3020 = vxpose.xlu1.b32.cont [12/16] (narrow) %v4996_v53, 64 }
 0x232   : > { %3021 = vxpose.xlu1.b32.cont [13/16] (narrow) %v4999_v14, 64 }
 0x236   : > { %3022 = vxpose.xlu1.b32.cont [14/16] (narrow) %v4998_v6, 64 }
 0x23a   : > { %3023 = vxpose.xlu1.b32.cont [15/16] (narrow) %v5001_v22, 64 }
 0x23e   : > { %3024 = vxpose.xlu1.b32.end [16/16] (narrow) %v5000_v18, 64 }
 0x262   : > { %v6440_v24 = vpop.trf.xlu0 }
 0x263   : > { %v3065_v30 = vmul.f32 %v6440_v24, %v6440_v24 }
 0x266   : > { %v6442_v26 = vpop.trf.xlu0 }
 0x267   : > { %v3067_v46 = vmul.f32 %v6442_v26, %v6442_v26 }
 0x26a   : > { %v6444_v28 = vpop.trf.xlu0 }
 0x26b   : > { %v3069_v50 = vmul.f32 %v6444_v28, %v6444_v28 }
 0x26e   : > { %v6456_v42 = vpop.trf.xlu0 }
 0x26f   : > { %v3071_v19 = vmul.f32 %v6456_v42, %v6456_v42 }
 0x272   : > { %v6472_v7 = vpop.trf.xlu0 }
 0x273   : > { %v3073_v23 = vmul.f32 %v6472_v7, %v6472_v7 }
 0x276   : > { %v6486_v27 = vpop.trf.xlu0 }
 0x277   : > { %v3075_v43 = vmul.f32 %v6486_v27, %v6486_v27 }
 0x27a   : > { %v6496_v41 = vpop.trf.xlu0 }
 0x27b   : > { %v3077_v47 = vmul.f32 %v6496_v41, %v6496_v41 }
 0x27e   : > { %v6510_v55 = vpop.trf.xlu0 }
 0x27f   : > { %v3079_v60 = vmul.f32 %v6510_v55, %v6510_v55 }
 0x282   : > { %v6448_v32 = vpop.trf.xlu1 }
 0x283   : > { %v3041_v34 = vadd.f32 %v6448_v32, %v6440_v24  ;;  %v3066_v36 = vmul.f32 %v6448_v32, %v6448_v32 }
 0x285   : > { %3042 = vadd.xlane.f32.xlu0 %v3041_v34  ;;  %v3081_v38 = vadd.f32 %v3066_v36, %v3065_v30 }
 0x286   : > { %v6454_v40 = vpop.trf.xlu1 }
 0x287   : > { %3082 = vadd.xlane.f32.xlu1 %v3081_v38  ;;  %v3044_v44 = vadd.f32 %v6454_v40, %v6442_v26  ;;  %v3068_v48 = vmul.f32 %v6454_v40, %v6454_v40 }
 0x289   : > { %v3084_v9 = vadd.f32 %v3068_v48, %v3067_v46 }
 0x28a   : > { %v6466_v51 = vpop.trf.xlu1 }
 0x28b   : > { %3045 = vadd.xlane.f32.xlu1 %v3044_v44  ;;  %v3047_v1 = vadd.f32 %v6466_v51, %v6444_v28  ;;  %v3070_v5 = vmul.f32 %v6466_v51, %v6466_v51 }
 0x28d   : > { %3048 = vadd.xlane.f32.xlu0 %v3047_v1  ;;  %v3087_v13 = vadd.f32 %v3070_v5, %v3069_v50 }
 0x28e   : > { %v6474_v15 = vpop.trf.xlu1 }
 0x28f   : > { %3085 = vadd.xlane.f32.xlu1 %v3084_v9  ;;  %v3050_v17 = vadd.f32 %v6474_v15, %v6456_v42  ;;  %v3072_v21 = vmul.f32 %v6474_v15, %v6474_v15 }
 0x291   : > { %3088 = vadd.xlane.f32.xlu0 %v3087_v13  ;;  %v3090_v33 = vadd.f32 %v3072_v21, %v3071_v19  ;;  %v3115_v19 = vld [vmem:[%s6783_s2 + $0x8] sm:$0xff]  ;;  %v3116_v21 = vld [vmem:[%s6783_s2 + $0x10] sm:$0xff] }
 0x292   : > { %v6484_v25 = vpop.trf.xlu1 }
 0x293   : > { %3051 = vadd.xlane.f32.xlu1 %v3050_v17  ;;  %v3053_v29 = vadd.f32 %v6484_v25, %v6472_v7  ;;  %v3074_v31 = vmul.f32 %v6484_v25, %v6484_v25 }
 0x295   : > { %3054 = vadd.xlane.f32.xlu0 %v3053_v29  ;;  %v3093_v35 = vadd.f32 %v3074_v31, %v3073_v23  ;;  %v3117_v23 = vld [vmem:[%s6783_s2 + $0x18] sm:$0xff] }
 0x296   : > { %v6492_v37 = vpop.trf.xlu1 }
 0x297   : > { %3091 = vadd.xlane.f32.xlu1 %v3090_v33  ;;  %v3056_v39 = vadd.f32 %v6492_v37, %v6486_v27  ;;  %v3076_v45 = vmul.f32 %v6492_v37, %v6492_v37 }
 0x299   : > { %3094 = vadd.xlane.f32.xlu0 %v3093_v35  ;;  %v3096_v56 = vadd.f32 %v3076_v45, %v3075_v43 }
 0x29a   : > { %v6504_v49 = vpop.trf.xlu1 }
 0x29b   : > { %3057 = vadd.xlane.f32.xlu1 %v3056_v39  ;;  %v3059_v52 = vadd.f32 %v6504_v49, %v6496_v41  ;;  %v3078_v54 = vmul.f32 %v6504_v49, %v6504_v49 }
 0x29d   : > { %3060 = vadd.xlane.f32.xlu0 %v3059_v52  ;;  %v3099_v57 = vadd.f32 %v3078_v54, %v3077_v47 }
 0x29e   : > { %v6512_v58 = vpop.trf.xlu1 }
 0x29f   : > { %3097 = vadd.xlane.f32.xlu1 %v3096_v56  ;;  %v3062_v59 = vadd.f32 %v6512_v58, %v6510_v55  ;;  %v3080_v63 = vmul.f32 %v6512_v58, %v6512_v58 }
 0x2a1   : > { %3100 = vadd.xlane.f32.xlu0 %v3099_v57  ;;  %v3102_v0 = vadd.f32 %v3080_v63, %v3079_v60 }
 0x2a3   : > { %3063 = vadd.xlane.f32.xlu1 %v3062_v59  ;;  %v3260_v59 = vld [vmem:[%s6784_s3] sm:$0xff] }
 0x2a7   : > { %3103 = vadd.xlane.f32.xlu1 %v3102_v0 }
 0x312   : > { %v3043_v4 = vpop.xlane.xlu0 %3042 }
 0x314   : > { %v3083_v3 = vpop.xlane.xlu1 %3082 }
 0x315   : > { %v3106_v11 = vsel %vm3105_vm3, %v3043_v4, %v3083_v3 }
 0x318   : > { %v3046_v62 = vpop.xlane.xlu1 %3045 }
 0x31a   : > { %v3049_v61 = vpop.xlane.xlu0 %3048 }
 0x31c   : > { %v3086_v53 = vpop.xlane.xlu1 %3085 }
 0x31d   : > { %v3107_v10 = vsel %vm3105_vm3, %v3046_v62, %v3086_v53 }
 0x31e   : > { %v4944_v8 = vpack.c.bf16 %v3107_v10, %v3106_v11  ;;  %v3089_v6 = vpop.xlane.xlu0 %3088 }
 0x31f   : > { %v3108_v18 = vsel %vm3105_vm3, %v3049_v61, %v3089_v6 }
 0x320   : > { %4945 = vmatprep.subr.bf16.mxu1 %v4944_v8  ;;  %v3052_v12 = vpop.xlane.xlu1 %3051 }
 0x321   : > { %4947 = vmatpush3.bf16.msra.mxu1 %v4944_v8 }
 0x322   : > { %v3055_v14 = vpop.xlane.xlu0 %3054 }
 0x324   : > { %v3092_v16 = vpop.xlane.xlu1 %3091 }
 0x325   : > { %v3109_v20 = vsel %vm3105_vm3, %v3052_v12, %v3092_v16 }
 0x326   : > { %v4948_v22 = vpack.c.bf16 %v3109_v20, %v3108_v18  ;;  %v3095_v30 = vpop.xlane.xlu0 %3094 }
 0x327   : > { %v3110_v44 = vsel %vm3105_vm3, %v3055_v14, %v3095_v30 }
 0x328   : > { %4949 = vmatprep.subr.bf16.mxu1 %v4948_v22  ;;  %v3058_v34 = vpop.xlane.xlu1 %3057 }
 0x329   : > { %4951 = vmatpush3.bf16.msra.mxu1 %v4948_v22 }
 0x32a   : > { %v3061_v36 = vpop.xlane.xlu0 %3060 }
 0x32c   : > { %v3098_v38 = vpop.xlane.xlu1 %3097 }
 0x32d   : > { %v3111_v46 = vsel %vm3105_vm3, %v3058_v34, %v3098_v38 }
 0x32e   : > { %v4952_v48 = vpack.c.bf16 %v3111_v46, %v3110_v44  ;;  %v3101_v1 = vpop.xlane.xlu0 %3100 }
 0x32f   : > { %v3112_v9 = vsel %vm3105_vm3, %v3061_v36, %v3101_v1  ;;  %v3262_v1 = vld [vmem:[%s6784_s3 + $0x10] sm:$0xff] }
 0x330   : > { %4953 = vmatprep.subr.bf16.mxu1 %v4952_v48  ;;  %v3064_v50 = vpop.xlane.xlu1 %3063 }
 0x331   : > { %4955 = vmatpush3.bf16.msra.mxu1 %v4952_v48 }
 0x334   : > { %v3104_v5 = vpop.xlane.xlu1 %3103 }
 0x335   : > { %v3113_v13 = vsel %vm3105_vm3, %v3064_v50, %v3104_v5  ;;  %v3261_v50 = vld [vmem:[%s6784_s3 + $0x8] sm:$0xff]  ;;  %v3263_v5 = vld [vmem:[%s6784_s3 + $0x18] sm:$0xff] }
 0x336   : > { %v4956_v17 = vpack.c.bf16 %v3113_v13, %v3112_v9  ;;  %v3264_v9 = vld [vmem:[%s6784_s3 + $0x20] sm:$0xff]  ;;  %v3265_v13 = vld [vmem:[%s6784_s3 + $0x28] sm:$0xff] }
 0x338   : > { %4957 = vmatprep.subr.bf16.mxu1 %v4956_v17 }
 0x339   : > { %4959 = vmatpush3.bf16.msra.mxu1 %v4956_v17  ;;  %v3266_v17 = vld [vmem:[%s6784_s3 + $0x30] sm:$0xff] }
 0x33c   : > { %4919 = vmatmul.mubr.msk.f32.vlgmr.msra.gmra.mrb[32].mxu1 %vm3118_vm2, %v3115_v19  ;;  %v3267_v19 = vld [vmem:[%s6784_s3 + $0x38] sm:$0xff] }
 0x33d   : > { %4921 = vmatprep.mubr.msk.f32.mxu1 %vm3118_vm2, %v3116_v21  ;;  %v5410_v21 = vmov 0  }
 0x33e   : > { %5271 = vset.pattern.permute.xlu0 %v5410_v21  ;;  %5272 = vset.pattern.permute.xlu1 %v5410_v21  ;;  %v3452_v21 = vld [vmem:[%s6786_s5 + $0x30] sm:$0xff] }
 0x340   : > { %4922 = vmatmul.mubr.msk.f32.gmra.mrb[34].mxu1 %vm3118_vm2, %v3117_v23 }
 0x341   : > { %4932 = vmatprep.mubr.msk.f32.mxu1 %vm3268_vm4, %v3260_v59 }
 0x40f   : > { %v4920_v29 = vpop.f32.mrb[32].mxu1 }
 0x410   : > { %v3217_v31 = vmul.f32 0.001953125, %v4920_v29  ;;  %v3197_v33 = vpop.f32.mrb[33].mxu1 }
 0x411   : > { %v3216_v35 = vmul.f32 0.001953125, %v3197_v33 }
 0x412   : > { %v3221_v39 = vmul.f32 %v3217_v31, %v3217_v31 }
 0x413   : > { %v4923_v43 = vpop.f32.mrb[34].mxu1  ;;  %v3220_v45 = vmul.f32 %v3216_v35, %v3216_v35 }
 0x414   : > { %v3219_v47 = vmul.f32 0.001953125, %v4923_v43  ;;  %3230 = vrot.lane.b32.xlu1 %v3221_v39, %s5409_s10  ;;  %v3207_v52 = vpop.f32.mrb[35].mxu1 }
 0x415   : > { %v3218_v54 = vmul.f32 0.001953125, %v3207_v52  ;;  %3228 = vrot.lane.b32.xlu0 %v3220_v45, %s5409_s10  ;;  %v3398_v52 = vld [vmem:[%s6785_s4] sm:$0xff] }
 0x416   : > { %v3223_v56 = vmul.f32 %v3219_v47, %v3219_v47 }
 0x417   : > { %v3222_v57 = vmul.f32 %v3218_v54, %v3218_v54 }
 0x419   : > { %3234 = vrot.lane.b32.xlu0 %v3223_v56, %s5409_s10  ;;  %3232 = vrot.lane.b32.xlu1 %v3222_v57, %s5409_s10  ;;  %s5349_s10 = sshll.u32 %s5412_s9, 4  ;;  %s5350_s10 = int_to_ptr.vmem [resolvable:$false] %s5349_s10 }
 0x41a   : > { %s5351_s11 = scalar_lea.vmem %s5350_s10, 4096  ;;  %p5352_p0 = scmp.lt.s32.totalorder %s6733_s19, %s5350_s10 }
 0x41b   : > { %p5353_p1 = scmp.lt.s32.totalorder %s5351_s11, %s5345_s29 }
 0x41d   : > { %p5354_p2 = por %p5353_p1, %p5352_p0 }
 0x41f   : > { %p5355_p3 = pnand %p5354_p2, %p5348_p13 }
 0x486   : > { %v3231_v60 = vpop.permute.xlu1 %3230 }
 0x487   : > { %v3241_v63 = vsub.f32 %v3217_v31, %v3231_v60  ;;  %v3229_v0 = vpop.permute.xlu0 %3228  ;;  %v3401_v60 = vld [vmem:[%s6785_s4 + $0x18] sm:$0xff] }
 0x488   : > { %v3240_v2 = vsub.f32 %v3216_v35, %v3229_v0  ;;  %v3446_v0 = vld [vmem:[%s6786_s5] sm:$0xff] }
 0x489   : > { %v3245_v3 = vmax.f32 %v3241_v63, 0.0  ;;  %v3400_v63 = vld [vmem:[%s6785_s4 + $0x10] sm:$0xff] }
 0x48a   : > { %v3244_v4 = vmax.f32 %v3240_v2, 0.0 }
 0x48b   : > { %v3249_v62 = vadd.f32 1e-05, %v3245_v3  ;;  %v3235_v61 = vpop.permute.xlu0 %3234  ;;  %v3233_v53 = vpop.permute.xlu1 %3232 }
 0x48c   : > { %v3248_v11 = vadd.f32 1e-05, %v3244_v4  ;;  %v3243_v10 = vsub.f32 %v3219_v47, %v3235_v61  ;;  %v3242_v8 = vsub.f32 %v3218_v54, %v3233_v53 }
 0x48d   : > { %5273 = vrsqrt.f32 %v3249_v62 }
 0x48e   : > { %5275 = vrsqrt.f32 %v3248_v11  ;;  %v3247_v6 = vmax.f32 %v3243_v10, 0.0  ;;  %v3246_v12 = vmax.f32 %v3242_v8, 0.0  ;;  %v3402_v10 = vld [vmem:[%s6785_s4 + $0x20] sm:$0xff]  ;;  %v3447_v8 = vld [vmem:[%s6786_s5 + $0x8] sm:$0xff] }
 0x490   : > { %v3251_v14 = vadd.f32 1e-05, %v3247_v6  ;;  %v3250_v16 = vadd.f32 1e-05, %v3246_v12 }
 0x492   : > { %5277 = vrsqrt.f32 %v3251_v14 }
 0x493   : > { %5279 = vrsqrt.f32 %v3250_v16 }
 0x497   : > { %v5274_v18 = vpop.eup %5273 }
 0x498   : > { %v5276_v20 = vpop.eup %5275  ;;  %v3257_v22 = vsel %vm3105_vm3, %v3217_v31, %v5274_v18  ;;  %v3448_v18 = vld [vmem:[%s6786_s5 + $0x10] sm:$0xff] }
 0x499   : > { %v3256_v30 = vsel %vm3105_vm3, %v3216_v35, %v5276_v20 }
 0x49a   : > { %v4960_v34 = vpack.c.bf16 %v3257_v22, %v3256_v30  ;;  %v3403_v22 = vld [vmem:[%s6785_s4 + $0x28] sm:$0xff] }
 0x49c   : > { %v5278_v36 = vpop.eup %5277  ;;  %4961 = vmatprep.subr.bf16.mxu1 %v4960_v34 }
 0x49d   : > { %v5280_v38 = vpop.eup %5279  ;;  %4963 = vmatpush3.bf16.msra.mxu1 %v4960_v34  ;;  %v3259_v44 = vsel %vm3105_vm3, %v3219_v47, %v5278_v36  ;;  %v3399_v47 = vld [vmem:[%s6785_s4 + $0x8] sm:$0xff]  ;;  %v3404_v34 = vld [vmem:[%s6785_s4 + $0x30] sm:$0xff] }
 0x49e   : > { %v3258_v46 = vsel %vm3105_vm3, %v3218_v54, %v5280_v38 }
 0x49f   : > { %v4964_v48 = vpack.c.bf16 %v3259_v44, %v3258_v46 }
 0x4a1   : > { %4965 = vmatprep.subr.bf16.mxu1 %v4964_v48 }
 0x4a2   : > { %4967 = vmatpush3.bf16.msra.mxu1 %v4964_v48 }
 0x4a5   : > { %4933 = vmatmul.mubr.msk.f32.vlgmr.msra.gmra.mrb[36].mxu1 %vm3268_vm4, %v3261_v50  ;;  %v3449_v50 = vld [vmem:[%s6786_s5 + $0x18] sm:$0xff] }
 0x4a6   : > { %4935 = vmatprep.mubr.msk.f32.mxu1 %vm3268_vm4, %v3262_v1  ;;  %v3450_v1 = vld [vmem:[%s6786_s5 + $0x20] sm:$0xff] }
 0x4a9   : > { %4936 = vmatmul.mubr.msk.f32.gmra.mrb[38].mxu1 %vm3268_vm4, %v3263_v5 }
 0x4aa   : > { %4938 = vmatprep.mubr.msk.f32.mxu1 %vm3268_vm4, %v3264_v9 }
 0x4ad   : > { %4939 = vmatmul.mubr.msk.f32.gmra.mrb[40].mxu1 %vm3268_vm4, %v3265_v13 }
 0x4ae   : > { %4941 = vmatprep.mubr.msk.f32.mxu1 %vm3268_vm4, %v3266_v17  ;;  %v3405_v17 = vld [vmem:[%s6785_s4 + $0x38] sm:$0xff] }
 0x4b1   : > { %4942 = vmatmul.mubr.msk.f32.gmra.mrb[42].mxu1 %vm3268_vm4, %v3267_v19 }
 0x578   : > { %v4934_v23 = vpop.f32.mrb[36].mxu1 }
 0x579   : > { %3416 = vrot.lane.b32.xlu0 %v4934_v23, %s5411_s12  ;;  %v3359_v29 = vpop.f32.mrb[37].mxu1 }
 0x57a   : > { %3414 = vrot.lane.b32.xlu1 %v3359_v29, %s5411_s12 }
 0x57c   : > { %v4937_v31 = vpop.f32.mrb[38].mxu1 }
 0x57d   : > { %3420 = vrot.lane.b32.xlu0 %v4937_v31, %s5411_s12  ;;  %v3369_v33 = vpop.f32.mrb[39].mxu1 }
 0x57e   : > { %3418 = vrot.lane.b32.xlu1 %v3369_v33, %s5411_s12 }
 0x580   : > { %v4940_v35 = vpop.f32.mrb[40].mxu1 }
 0x581   : > { %3424 = vrot.lane.b32.xlu0 %v4940_v35, %s5411_s12  ;;  %v3379_v39 = vpop.f32.mrb[41].mxu1 }
 0x582   : > { %3422 = vrot.lane.b32.xlu1 %v3379_v39, %s5411_s12 }
 0x584   : > { %v4943_v43 = vpop.f32.mrb[42].mxu1 }
 0x585   : > { %3428 = vrot.lane.b32.xlu0 %v4943_v43, %s5411_s12  ;;  %v3389_v45 = vpop.f32.mrb[43].mxu1 }
 0x586   : > { %3426 = vrot.lane.b32.xlu1 %v3389_v45, %s5411_s12 }
 0x5eb   : > { %v3417_v54 = vpop.permute.xlu0 %3416 }
 0x5ec   : > { %v3439_v56 = vmul.f32 %v3417_v54, %v3399_v47  ;;  %v3415_v57 = vpop.permute.xlu1 %3414  ;;  %v3453_v47 = vld [vmem:[%s6786_s5 + $0x38] sm:$0xff] }
 0x5ed   : > { %v3438_v59 = vmul.f32 %v3415_v57, %v3398_v52 }
 0x5ee   : > { %3477 = vperm.xlu0 %5271, %v3439_v56   ;;  %v3455_v61 = vmul.f32 %v4934_v23, %v3439_v56 }
 0x5ef   : > { %v3454_v2 = vmul.f32 %v3438_v59, %v3359_v29  ;;  %v3421_v3 = vpop.permute.xlu0 %3420  ;;  %3472 = vperm.xlu1 %5272, %v3438_v59  }
 0x5f0   : > { %v3441_v4 = vmul.f32 %v3421_v3, %v3401_v60  ;;  %v3419_v62 = vpop.permute.xlu1 %3418  ;;  %v3463_v16 = vsub.f32 %v3447_v8, %v3455_v61 }
 0x5f1   : > { %v3440_v53 = vmul.f32 %v3419_v62, %v3400_v63  ;;  %v3462_v11 = vsub.f32 %v3446_v0, %v3454_v2 }
 0x5f2   : > { %v3457_v38 = vmul.f32 %v4937_v31, %v3441_v4 }
 0x5f3   : > { %3528 = vperm.xlu0 %5271, %v3462_v11   ;;  %3487 = vperm.xlu1 %5272, %v3441_v4   ;;  %v3456_v12 = vmul.f32 %v3440_v53, %v3369_v33  ;;  %v3425_v30 = vpop.permute.xlu0 %3424  ;;  %v3451_v33 = vld [vmem:[%s6786_s5 + $0x28] sm:$0xff] }
 0x5f4   : > { %v3423_v6 = vpop.permute.xlu1 %3422  ;;  %v3443_v44 = vmul.f32 %v3425_v30, %v3403_v22  ;;  %v3465_v9 = vsub.f32 %v3449_v50, %v3457_v38 }
 0x5f5   : > { %v3442_v14 = vmul.f32 %v3423_v6, %v3402_v10  ;;  %v3464_v20 = vsub.f32 %v3448_v18, %v3456_v12 }
 0x5f6   : > { %v3459_v23 = vmul.f32 %v4940_v35, %v3443_v44 }
 0x5f7   : > { %3492 = vperm.xlu0 %5271, %v3442_v14   ;;  %3533 = vperm.xlu1 %5272, %v3463_v16   ;;  %v3458_v46 = vmul.f32 %v3442_v14, %v3379_v39  ;;  %v3429_v19 = vpop.permute.xlu0 %3428 }
 0x5f8   : > { %v3427_v36 = vpop.permute.xlu1 %3426  ;;  %v3445_v29 = vmul.f32 %v3429_v19, %v3405_v17 }
 0x5f9   : > { %v3444_v48 = vmul.f32 %v3427_v36, %v3404_v34  ;;  %v3466_v13 = vsub.f32 %v3450_v1, %v3458_v46 }
 0x5fa   : > { %v3461_v39 = vmul.f32 %v4943_v43, %v3445_v29 }
 0x5fb   : > { %3538 = vperm.xlu0 %5271, %v3464_v20   ;;  %3482 = vperm.xlu1 %5272, %v3440_v53   ;;  %v3460_v5 = vmul.f32 %v3444_v48, %v3389_v45  ;;  %v3467_v45 = vsub.f32 %v3451_v33, %v3459_v23 }
 0x5fc   : > { %v3469_v52 = vsub.f32 %v3453_v47, %v3461_v39 }
 0x5fd   : > { %v3468_v31 = vsub.f32 %v3452_v21, %v3460_v5 }
 0x5ff   : > { %3497 = vperm.xlu1 %5272, %v3443_v44   ;;  %3502 = vperm.xlu0 %5271, %v3444_v48  }
 0x603   : > { %3543 = vperm.xlu1 %5272, %v3465_v9   ;;  %3548 = vperm.xlu0 %5271, %v3466_v13  }
 0x607   : > { %3507 = vperm.xlu1 %5272, %v3445_v29   ;;  %3558 = vperm.xlu0 %5271, %v3468_v31  }
 0x60b   : > { %3553 = vperm.xlu1 %5272, %v3467_v45  }
 0x60f   : > { %3563 = vperm.xlu1 %5272, %v3469_v52  }
 0x66d   : > { %v3478_v54 = vpop.permute.xlu0 %3477 }
 0x66e   : > { %v3473_v56 = vpop.permute.xlu1 %3472  ;;  %v3512_v43 = vmul.f32 %v3478_v54, %v6442_v26  ;;  %v3513_v4 = vmul.f32 %v3478_v54, %v6454_v40 }
 0x66f   : > { %v3510_v35 = vmul.f32 %v3473_v56, %v6440_v24  ;;  %v3511_v57 = vmul.f32 %v3473_v56, %v6448_v32 }
 0x672   : > { %v3529_v59 = vpop.permute.xlu0 %3528  ;;  %v3488_v60 = vpop.permute.xlu1 %3487 }
 0x673   : > { %v6630_v63 = vadd.f32 %v3529_v59, %v3510_v35  ;;  %v6632_v0 = vadd.f32 %v3529_v59, %v3511_v57  ;;  %v3516_v30 = vmul.f32 %v3488_v60, %v6456_v42  ;;  %v3517_v38 = vmul.f32 %v3488_v60, %v6474_v15 }
 0x675   : > { %v4109_v2 = vmul.f32 -1.442695, %v6630_v63  ;;  %v4110_v3 = vmul.f32 -1.442695, %v6632_v0 }
 0x676   : > { %v3493_v62 = vpop.permute.xlu0 %3492  ;;  %v3534_v61 = vpop.permute.xlu1 %3533 }
 0x677   : > { %5281 = vpow2.f32 %v4109_v2  ;;  %v6638_v24 = vadd.f32 %v3534_v61, %v3512_v43  ;;  %v6640_v32 = vadd.f32 %v3534_v61, %v3513_v4  ;;  %v3518_v34 = vmul.f32 %v3493_v62, %v6472_v7 }
 0x678   : > { %5283 = vpow2.f32 %v4110_v3 }
 0x679   : > { %v4111_v53 = vmul.f32 -1.442695, %v6638_v24  ;;  %v4112_v11 = vmul.f32 -1.442695, %v6640_v32 }
 0x67a   : > { %v3539_v10 = vpop.permute.xlu0 %3538  ;;  %v3483_v26 = vpop.permute.xlu1 %3482 }
 0x67b   : > { %5285 = vpow2.f32 %v4111_v53  ;;  %v3514_v8 = vmul.f32 %v3483_v26, %v6444_v28  ;;  %v3515_v6 = vmul.f32 %v3483_v26, %v6466_v51  ;;  %v3519_v28 = vmul.f32 %v3493_v62, %v6484_v25 }
 0x67c   : > { %5287 = vpow2.f32 %v4112_v11 }
 0x67d   : > { %v6646_v40 = vadd.f32 %v3539_v10, %v3514_v8  ;;  %v6648_v12 = vadd.f32 %v3539_v10, %v3515_v6 }
 0x67e   : > { %v3503_v14 = vpop.permute.xlu0 %3502  ;;  %v3498_v16 = vpop.permute.xlu1 %3497 }
 0x67f   : > { %v4113_v18 = vmul.f32 -1.442695, %v6646_v40  ;;  %v4114_v20 = vmul.f32 -1.442695, %v6648_v12  ;;  %v3522_v25 = vmul.f32 %v3503_v14, %v6496_v41  ;;  %v3523_v17 = vmul.f32 %v3503_v14, %v6504_v49 }
 0x680   : > { %v3520_v49 = vmul.f32 %v3498_v16, %v6486_v27  ;;  %v3521_v45 = vmul.f32 %v3498_v16, %v6492_v37 }
 0x681   : > { %v5282_v22 = vpop.eup %5281  ;;  %5289 = vpow2.f32 %v4113_v18 }
 0x682   : > { %v5284_v51 = vpop.eup %5283  ;;  %v3630_v36 = vadd.f32 1.0, %v5282_v22  ;;  %5291 = vpow2.f32 %v4114_v20  ;;  %v3549_v44 = vpop.permute.xlu0 %3548 }
 0x683   : > { %v3544_v46 = vpop.permute.xlu1 %3543  ;;  %v3631_v48 = vadd.f32 1.0, %v5284_v51  ;;  %v6656_v50 = vadd.f32 %v3549_v44, %v3518_v34  ;;  %v6658_v1 = vadd.f32 %v3549_v44, %v3519_v28 }
 0x684   : > { %v6660_v5 = vadd.f32 %v3544_v46, %v3516_v30  ;;  %5293 = vrcp.f32 %v3630_v36  ;;  %v6662_v42 = vadd.f32 %v3544_v46, %v3517_v38 }
 0x685   : > { %v5286_v7 = vpop.eup %5285  ;;  %5295 = vrcp.f32 %v3631_v48  ;;  %v4117_v15 = vmul.f32 -1.442695, %v6656_v50  ;;  %v4118_v19 = vmul.f32 -1.442695, %v6658_v1 }
 0x686   : > { %v5288_v9 = vpop.eup %5287  ;;  %v3632_v13 = vadd.f32 1.0, %v5286_v7  ;;  %v3559_v21 = vpop.permute.xlu0 %3558  ;;  %v4115_v31 = vmul.f32 -1.442695, %v6660_v5  ;;  %v4116_v41 = vmul.f32 -1.442695, %v6662_v42 }
 0x687   : > { %v3508_v23 = vpop.permute.xlu1 %3507  ;;  %v3633_v29 = vadd.f32 1.0, %v5288_v9  ;;  %5297 = vpow2.f32 %v4117_v15  ;;  %v6669_v33 = vadd.f32 %v3559_v21, %v3522_v25  ;;  %v6673_v39 = vadd.f32 %v3559_v21, %v3523_v17 }
 0x688   : > { %5299 = vrcp.f32 %v3632_v13  ;;  %v3524_v27 = vmul.f32 %v3508_v23, %v6510_v55  ;;  %v3525_v43 = vmul.f32 %v3508_v23, %v6512_v58 }
 0x689   : > { %5301 = vrcp.f32 %v3633_v29  ;;  %v4121_v47 = vmul.f32 -1.442695, %v6669_v33  ;;  %v4122_v60 = vmul.f32 -1.442695, %v6673_v39 }
 0x68a   : > { %5303 = vpow2.f32 %v4118_v19 }
 0x68b   : > { %v3554_v52 = vpop.permute.xlu1 %3553  ;;  %v5290_v54 = vpop.eup %5289  ;;  %5305 = vpow2.f32 %v4115_v31 }
 0x68c   : > { %v6680_v56 = vadd.f32 %v3554_v52, %v3520_v49  ;;  %v6682_v35 = vadd.f32 %v3554_v52, %v3521_v45  ;;  %v5292_v57 = vpop.eup %5291  ;;  %v3634_v59 = vadd.f32 1.0, %v5290_v54  ;;  %5307 = vpow2.f32 %v4116_v41 }
 0x68d   : > { %v3635_v37 = vadd.f32 1.0, %v5292_v57  ;;  %5309 = vpow2.f32 %v4121_v47 }
 0x68e   : > { %v4119_v2 = vmul.f32 -1.442695, %v6680_v56  ;;  %v5294_v3 = vpop.eup %5293  ;;  %5311 = vrcp.f32 %v3634_v59  ;;  %v4120_v4 = vmul.f32 -1.442695, %v6682_v35 }
 0x68f   : > { %v3564_v62 = vpop.permute.xlu1 %3563  ;;  %v5296_v61 = vpop.eup %5295  ;;  %v3678_v53 = vmul.f32 %v5294_v3, %v6630_v63  ;;  %5313 = vrcp.f32 %v3635_v37 }
 0x690   : > { %v6690_v11 = vadd.f32 %v3564_v62, %v3524_v27  ;;  %v6692_v10 = vadd.f32 %v3564_v62, %v3525_v43  ;;  %v3679_v55 = vmul.f32 %v5296_v61, %v6632_v0  ;;  %5315 = vpow2.f32 %v4122_v60 }
 0x691   : > { %v5298_v26 = vpop.eup %5297  ;;  %3694 = vst [vmem:[%s6695_s17] sm:$0xff] %v3678_v53  ;;  %5317 = vpow2.f32 %v4119_v2 }
 0x692   : > { %v4123_v58 = vmul.f32 -1.442695, %v6690_v11  ;;  %v4124_v63 = vmul.f32 -1.442695, %v6692_v10  ;;  %v5300_v8 = vpop.eup %5299  ;;  %3695 = vst [vmem:[%s6695_s17 + $0x8] sm:$0xff] %v3679_v55  ;;  %v3638_v6 = vadd.f32 1.0, %v5298_v26  ;;  %5319 = vpow2.f32 %v4120_v4 }
 0x693   : > { %v5302_v14 = vpop.eup %5301  ;;  %v3680_v0 = vmul.f32 %v5300_v8, %v6638_v24 }
 0x694   : > { %5321 = vpow2.f32 %v4123_v58  ;;  %v5304_v16 = vpop.eup %5303  ;;  %v3681_v18 = vmul.f32 %v5302_v14, %v6640_v32 }
 0x695   : > { %5323 = vrcp.f32 %v3638_v6  ;;  %v5306_v20 = vpop.eup %5305  ;;  %3696 = vst [vmem:[%s6695_s17 + $0x10] sm:$0xff] %v3680_v0  ;;  %v3639_v22 = vadd.f32 1.0, %v5304_v16 }
 0x696   : > { %5325 = vpow2.f32 %v4124_v63  ;;  %v5308_v30 = vpop.eup %5307  ;;  %3697 = vst [vmem:[%s6695_s17 + $0x18] sm:$0xff] %v3681_v18  ;;  %v3636_v34 = vadd.f32 1.0, %v5306_v20 }
 0x697   : > { %v5310_v28 = vpop.eup %5309  ;;  %5327 = vrcp.f32 %v3639_v22  ;;  %v3637_v51 = vadd.f32 1.0, %v5308_v30 }
 0x698   : > { %v5312_v36 = vpop.eup %5311  ;;  %5329 = vrcp.f32 %v3636_v34  ;;  %v3642_v24 = vadd.f32 1.0, %v5310_v28 }
 0x699   : > { %v5314_v38 = vpop.eup %5313  ;;  %v3682_v44 = vmul.f32 %v5312_v36, %v6646_v40  ;;  %5331 = vrcp.f32 %v3637_v51 }
 0x69a   : > { %v5316_v32 = vpop.eup %5315  ;;  %v3683_v46 = vmul.f32 %v5314_v38, %v6648_v12  ;;  %5333 = vrcp.f32 %v3642_v24 }
 0x69b   : > { %v5318_v48 = vpop.eup %5317  ;;  %3698 = vst [vmem:[%s6695_s17 + $0x20] sm:$0xff] %v3682_v44  ;;  %v3643_v7 = vadd.f32 1.0, %v5316_v32 }
 0x69c   : > { %v5320_v25 = vpop.eup %5319  ;;  %3699 = vst [vmem:[%s6695_s17 + $0x28] sm:$0xff] %v3683_v46  ;;  %v3640_v15 = vadd.f32 1.0, %v5318_v48 }
 0x69d   : > { %5335 = vrcp.f32 %v3643_v7  ;;  %v3641_v13 = vadd.f32 1.0, %v5320_v25 }
 0x69e   : > { %v5322_v9 = vpop.eup %5321  ;;  %5337 = vrcp.f32 %v3640_v15 }
 0x69f   : > { %v5324_v17 = vpop.eup %5323  ;;  %v3644_v19 = vadd.f32 1.0, %v5322_v9  ;;  %5339 = vrcp.f32 %v3641_v13 }
 0x6a0   : > { %v5326_v40 = vpop.eup %5325  ;;  %v3686_v21 = vmul.f32 %v5324_v17, %v6656_v50 }
 0x6a1   : > { %v3645_v12 = vadd.f32 1.0, %v5326_v40  ;;  %5341 = vrcp.f32 %v3644_v19  ;;  %v5328_v23 = vpop.eup %5327 }
 0x6a2   : > { %3702 = vst [vmem:[%s6695_s17 + $0x40] sm:$0xff] %v3686_v21  ;;  %v5330_v29 = vpop.eup %5329  ;;  %v3687_v31 = vmul.f32 %v5328_v23, %v6658_v1 }
 0x6a3   : > { %5343 = vrcp.f32 %v3645_v12  ;;  %v5332_v41 = vpop.eup %5331  ;;  %v3684_v49 = vmul.f32 %v5330_v29, %v6660_v5 }
 0x6a4   : > { %v5334_v45 = vpop.eup %5333  ;;  %3703 = vst [vmem:[%s6695_s17 + $0x48] sm:$0xff] %v3687_v31  ;;  %v3685_v50 = vmul.f32 %v5332_v41, %v6662_v42 }
 0x6a5   : > { %3700 = vst [vmem:[%s6695_s17 + $0x30] sm:$0xff] %v3684_v49  ;;  %v3690_v47 = vmul.f32 %v5334_v45, %v6669_v33 }
 0x6a6   : > { %3701 = vst [vmem:[%s6695_s17 + $0x38] sm:$0xff] %v3685_v50 }
 0x6a7   : > { %v5336_v52 = vpop.eup %5335  ;;  %3706 = vst [vmem:[%s6695_s17 + $0x60] sm:$0xff] %v3690_v47 }
 0x6a8   : > { %v5338_v1 = vpop.eup %5337  ;;  %v3691_v54 = vmul.f32 %v5336_v52, %v6673_v39 }
 0x6a9   : > { %v5340_v57 = vpop.eup %5339  ;;  %v3688_v5 = vmul.f32 %v5338_v1, %v6680_v56 }
 0x6aa   : > { %3707 = vst [vmem:[%s6695_s17 + $0x68] sm:$0xff] %v3691_v54  ;;  %v3689_v33 = vmul.f32 %v5340_v57, %v6682_v35 }
 0x6ab   : > { %v5342_v42 = vpop.eup %5341  ;;  %3704 = vst [vmem:[%s6695_s17 + $0x50] sm:$0xff] %v3688_v5 }
 0x6ac   : > { %v3692_v59 = vmul.f32 %v5342_v42, %v6690_v11  ;;  %3705 = vst [vmem:[%s6695_s17 + $0x58] sm:$0xff] %v3689_v33 }
 0x6ad   : > { %v5344_v60 = vpop.eup %5343 }
 0x6ae   : > { %v3693_v39 = vmul.f32 %v5344_v60, %v6692_v10  ;;  %3708 = vst [vmem:[%s6695_s17 + $0x70] sm:$0xff] %v3692_v59 }
 0x6b0   : > { %3709 = vst [vmem:[%s6695_s17 + $0x78] sm:$0xff] %v3693_v39 }
 0x6b1   : > { %5358 = shalt.err (!%p5355_p3)
}
 0x6b2   : > { %s5359_s12 = scalar_lea.hbm %s6731_s28, 2048  ;;  %s5363_s15 = scalar_lea.hbm %s6787_s6, 4096 }
 0x6b3   : > { %p5360_p4 = scmp.ne.s32.totalorder %s6731_s28, %s5359_s12  ;;  %p5364_p9 = scmp.lt.u32.totalorder %s6731_s28, %s6787_s6 }
 0x6b4   : > { %p5365_p10 = scmp.lt.u32.totalorder %s5363_s15, %s5359_s12  ;;  %p5367_p12 = scmp.lt.u32.totalorder %s5359_s12, %s6731_s28 }
 0x6b5   : > { %p5361_p7 = pnand %p5360_p4, %p5488_p5 }
 0x6b6   : > { %p5366_p11 = por %p5365_p10, %p5364_p9 }
 0x6b7   : > { %p5362_p8 = pneg %p5361_p7 }
 0x6b8   : > { %p5368_p13 = por %p5367_p12, %p5366_p11 }
 0x6ba   : > { %p5369_p0 = pnand %p5368_p13, %p5362_p8 }
 0x6bc   : > { %5372 = shalt.err (!%p5369_p0)
}
 0x6bd   : > { %s5413_s18 = smov 256   ;;  %s5414_s20 = smov 16  }
 0x6be   : > { %5227 = dma.vmem_to_hbm [thread:$0]  (%p5488_p5), %s6733_s19, 2048, %s6731_s28, %s6740_s25, %s5413_s18, %s5413_s18, %s5414_s20  }
 0x6bf PF: > { %p5233_p1 = scmp.ge.s32.totalorder %s5407_s24, 2  ;;  %s3739_s26 = sand.u32 1, %s5395_s21  }
 0x6c0   : > { %s3740_s29 = scalar_lea.sflag [#allocation3], %s3739_s26 }
 0x6c1   : > { %p5230_p2 = pnand %p5233_p1, %p5492_p6 }
 0x6c3   : > { %5390 = dma.done.wait (!%p5230_p2), %s3740_s29, 2048  }
 0x6c4   : > { %5392 = vsyncadd (!%p5230_p2), %s3740_s29, 4294965248  ;;  %p16_p3 = scmp.ge.s32.totalorder %s5475_s27, 4   ;;  %s6837_s21 = smov %s5399_s22 }
 0x6c5   : > { %s6838_s22 = smov %s5403_s23  ;;  %s6839_s23 = smov %s5486_s30 }
 0x6c6   : > { %s6840_s24 = smov %s5475_s27  ;;  %18 = sbr.rel (!%p16_p3) target bundleno = 3 (0x3), region = 87 }
 0x6cd   :  { %3745 = vsyncpa [#allocation3], 1 }
 0x6ce   :  { %3747 = vsyncpa [#allocation3 + $0x1], 1 }

</bundles_post_ra>
